<compile_context>
chip_gen: v7x
topology: tpu7x:2x2x1
jax: 0.10.0
libtpu: 0.0.40
codegen_flags: <defaults>
</compile_context>

<pallas_src>
import math
from functools import partial

import jax
import jax.numpy as jnp
from jax import lax
from jax.experimental import pallas as pl
from jax.experimental.pallas import tpu as pltpu


# --------------------------- VMEM / tiling budgets ----------------------------

def _vmem_limit_bytes():
    """Generation-aware scoped-VMEM limit (leave headroom for compiler scratch)."""
    cap = 128 * 1024 * 1024
    try:
        cap = int(pltpu.get_tpu_info().vmem_capacity_bytes)
    except Exception:
        pass
    # ~56% of physical: 128 MiB parts (v5e/v6e) -> 64 MiB cap, 64 MiB (v7x) -> ~36 MiB
    return int(min(cap * 9 // 16, 64 * 1024 * 1024))


def _pick_windows_per_step(nW, ws, C, io_itemsize, compute_itemsize,
                           vmem_limit_bytes, outer_steps):
    """Pick how many windows one grid step processes, from the VMEM budget."""
    N_ = ws * ws
    # resident weights (qkv + proj), pessimistically double-buffered, + bias
    fixed = 2 * compute_itemsize * 4 * C * C + 4 * C
    # per-window footprint: double-buffered in/out blocks + xw/qkv/attn scratches
    # (compute dtype) + f32 proj scratch + f32 softmax temps
    per_win = N_ * C * (4 * io_itemsize + 5 * compute_itemsize + 4) + 8 * N_ * N_
    budget = max(vmem_limit_bytes // 2 - fixed, per_win)
    gw = max(1, min(nW, budget // per_win))
    # keep >= 2 grid steps so both v7x TensorCores (and the DMA pipeline) get work
    while gw > 1 and outer_steps * (-(-nW // gw)) < 2:
        gw -= 1
    return int(gw)


# ------------------------------- fused kernel ---------------------------------

def _fused_window_attn_kernel(x_ref, wqkv_ref, wproj_ref, bproj_ref, o_ref,
                              xw_scr, qkv_scr, attn_scr, y_scr,
                              *, ws, gw, num_heads, head_dim, dim,
                              heads_per_group, approx_recip):
    N_ = ws * ws
    C = dim
    hd = head_dim
    cdt = qkv_scr.dtype  # MXU compute dtype (bf16 by default)

    # -- window partition: x block (ws, gw, ws, C) -> xw_scr (gw*N_, C), in VMEM --
    for g in range(gw):
        for r in range(ws):
            row0 = g * N_ + r * ws
            xw_scr[row0:row0 + ws, :] = x_ref[r, g].astype(cdt)

    # -- qkv projection (softmax scale already folded into the q columns of W) --
    qkv_scr[...] = jnp.dot(
        xw_scr[...], wqkv_ref[...], preferred_element_type=jnp.float32
    ).astype(cdt)

    # -- per-window multi-head attention; heads grouped for lane-dense stores --
    for g in range(gw):
        r0 = g * N_
        for grp in range(num_heads // heads_per_group):
            outs = []
            for h in range(grp * heads_per_group, (grp + 1) * heads_per_group):
                q = qkv_scr[r0:r0 + N_, h * hd:(h + 1) * hd]
                k = qkv_scr[r0:r0 + N_, C + h * hd:C + (h + 1) * hd]
                v = qkv_scr[r0:r0 + N_, 2 * C + h * hd:2 * C + (h + 1) * hd]
                s = lax.dot_general(q, k, (((1,), (1,)), ((), ())),
                                    preferred_element_type=jnp.float32)   # (N_,N_)
                m = jnp.max(s, axis=-1, keepdims=True)
                p = jnp.exp(s - m)
                denom = jnp.sum(p, axis=-1, keepdims=True)
                o_h = jnp.dot(p.astype(cdt), v,
                              preferred_element_type=jnp.float32)         # (N_,hd)
                # normalize after AV (hd instead of N_ multiplies); EUP reciprocal
                outs.append(o_h * pl.reciprocal(denom, approx=approx_recip))
            gout = outs[0] if len(outs) == 1 else jnp.concatenate(outs, axis=-1)
            c0 = grp * heads_per_group * hd
            attn_scr[r0:r0 + N_, c0:c0 + heads_per_group * hd] = gout.astype(cdt)

    # -- output projection (+ bias) for the whole block --
    y_scr[...] = jnp.dot(attn_scr[...], wproj_ref[...],
                         preferred_element_type=jnp.float32) + bproj_ref[...]

    # -- fold back: y_scr (gw*N_, C) -> o_ref block (ws, gw, ws, C) --
    for g in range(gw):
        for r in range(ws):
            row0 = g * N_ + r * ws
            o_ref[r, g] = y_scr[row0:row0 + ws, :].astype(o_ref.dtype)


# ------------------------------ forward wrapper -------------------------------

def windowed_attention_forward(x, H, W, params, *, num_heads, window_size,
                               compute_dtype=jnp.bfloat16,
                               approx_softmax_recip=True,
                               windows_per_step=None):
    B, N, C = x.shape
    assert N == H * W and C % num_heads == 0
    hd = C // num_heads
    scale = hd ** (-0.5)
    ws = window_size
    H_ = math.ceil(H / ws) * ws
    W_ = math.ceil(W / ws) * ws
    nH, nW = H_ // ws, W_ // ws
    N_ = ws * ws

    # Fold the softmax scale into the q columns of w_qkv (absorbed by the qkv
    # matmul); cast weights to the MXU-native compute dtype once.
    w_qkv = params["w_qkv"]
    w_qkv = jnp.concatenate([w_qkv[:, :C] * scale, w_qkv[:, C:]], axis=1)
    w_qkv = w_qkv.astype(compute_dtype)
    w_proj = params["w_proj"].astype(compute_dtype)
    b_proj = params["b_proj"].reshape(1, C).astype(jnp.float32)

    # Zero-pad bottom/right.  Because qkv_bias=False, projecting the zero rows
    # gives q=k=v=0 — exactly what F.pad on the qkv map produces in the reference.
    # TODO(synk): only pad_mode='constant' (the module default) is implemented.
    xg = x.reshape(B, H, W, C)
    if (H_, W_) != (H, W):
        xg = jnp.pad(xg, ((0, 0), (0, H_ - H), (0, W_ - W), (0, 0)))
    # Free reshape: window-row a = b*nH + i owns rows [a*ws, (a+1)*ws).
    x4 = xg.reshape(B * nH * ws, nW, ws, C)

    vmem_limit = _vmem_limit_bytes()
    gw = windows_per_step or _pick_windows_per_step(
        nW, ws, C, x.dtype.itemsize, jnp.dtype(compute_dtype).itemsize,
        vmem_limit, B * nH)
    gw = int(min(gw, nW))
    hpg = math.gcd(num_heads, max(1, 128 // hd))   # heads per lane-dense store
    GN = gw * N_
    grid = (B * nH, -(-nW // gw))                  # cdiv on the window-column axis

    kernel = partial(
        _fused_window_attn_kernel, ws=ws, gw=gw, num_heads=num_heads,
        head_dim=hd, dim=C, heads_per_group=hpg,
        approx_recip=approx_softmax_recip)

    win_spec = pl.BlockSpec((ws, gw, ws, C), lambda a, j: (a, j, 0, 0))

    out4 = pl.pallas_call(
        kernel,
        out_shape=jax.ShapeDtypeStruct((B * nH * ws, nW, ws, C), x.dtype),
        grid=grid,
        in_specs=[
            win_spec,
            pl.BlockSpec((C, 3 * C), lambda a, j: (0, 0)),   # resident weights
            pl.BlockSpec((C, C), lambda a, j: (0, 0)),
            pl.BlockSpec((1, C), lambda a, j: (0, 0)),
        ],
        out_specs=pl.BlockSpec((ws, gw, ws, C), lambda a, j: (a, j, 0, 0)),
        scratch_shapes=[
            pltpu.VMEM((GN, C), compute_dtype),       # window-relayouted tokens
            pltpu.VMEM((GN, 3 * C), compute_dtype),   # qkv
            pltpu.VMEM((GN, C), compute_dtype),       # attention output
            pltpu.VMEM((GN, C), jnp.float32),         # proj output (pre-store)
        ],
        compiler_params=pltpu.CompilerParams(
            dimension_semantics=("parallel", "parallel"),
            vmem_limit_bytes=vmem_limit,
        ),
    )(x4, w_qkv, w_proj, b_proj)

    out = out4.reshape(B, H_, W_, C)
    if (H_, W_) != (H, W):
        out = out[:, :H, :W, :]                       # crop the zero padding
    return out.reshape(B, N, C)


# ------------------------------ pure-JAX reference ----------------------------

def reference_forward(x, H, W, params, *, num_heads, window_size):
    B, N, C = x.shape
    hd = C // num_heads
    scale = hd ** (-0.5)
    ws = window_size
    H_ = math.ceil(H / ws) * ws
    W_ = math.ceil(W / ws) * ws
    nH, nW = H_ // ws, W_ // ws
    L, N_ = nH * nW, ws * ws

    qkv = x.reshape(B * N, C) @ params["w_qkv"]
    qkv = qkv.reshape(B, H, W, 3 * C)
    qkv = jnp.pad(qkv, ((0, 0), (0, H_ - H), (0, W_ - W), (0, 0)))
    qkv = qkv.reshape(B, nH, ws, nW, ws, 3 * C)
    qkv = qkv.transpose(0, 1, 3, 2, 4, 5).reshape(B, L, N_, 3, num_heads, hd)
    q, k, v = [qkv[:, :, :, i].transpose(0, 1, 3, 2, 4) for i in range(3)]
    attn = jnp.einsum("blhqd,blhkd->blhqk", q, k) * scale
    attn = jax.nn.softmax(attn, axis=-1)
    o = jnp.einsum("blhqk,blhkd->blhqd", attn, v)
    o = o.transpose(0, 1, 3, 2, 4).reshape(B, nH, nW, ws, ws, C)
    o = o.transpose(0, 1, 3, 2, 4, 5).reshape(B, H_, W_, C)[:, :H, :W, :]
    o = o.reshape(B * N, C) @ params["w_proj"] + params["b_proj"]
    return o.reshape(B, N, C)


# ----------------------------------- main -------------------------------------

if __name__ == "__main__":
    B, C, num_heads, window_size = 2, 128, 2, 4   # hd = 64 like real DINOv2
    H = W = 6                     # not a multiple of window_size -> exercises padding
    N = H * W

    key = jax.random.PRNGKey(0)
    kx, kq, kp, kb = jax.random.split(key, 4)
    x = jax.random.normal(kx, (B, N, C), dtype=jnp.float32)

    params = {
        # stored as (in_features, out_features) so the kernel computes x @ W
        "w_qkv": 0.02 * jax.random.normal(kq, (C, 3 * C), dtype=jnp.float32),
        "w_proj": 0.02 * jax.random.normal(kp, (C, C), dtype=jnp.float32),
        "b_proj": 0.02 * jax.random.normal(kb, (1, C), dtype=jnp.float32),
    }

    out = windowed_attention_forward(
        x, H, W, params, num_heads=num_heads, window_size=window_size)
    out = jax.block_until_ready(out)

    ref = reference_forward(
        x, H, W, params, num_heads=num_heads, window_size=window_size)
    assert out.shape == (B, N, C)
    # bf16 MXU operands + approx softmax reciprocal vs. a pure-f32 reference
    assert jnp.allclose(out, ref, atol=5e-3, rtol=5e-2), float(
        jnp.max(jnp.abs(out - ref)))

    print("KERNEL_OK")
</pallas_src>

<mosaic_0001>
module attributes {stable_mosaic.version = 11 : i64} {
  func.func @_fused_window_attn_kernel(%arg0: i32, %arg1: i32, %arg2: memref<4x2x4x128xf32, #tpu.memory_space<vmem>>, %arg3: memref<128x384xbf16, #tpu.memory_space<vmem>>, %arg4: memref<128x128xbf16, #tpu.memory_space<vmem>>, %arg5: memref<1x128xf32, #tpu.memory_space<vmem>>, %arg6: memref<4x2x4x128xf32, #tpu.memory_space<vmem>>, %arg7: memref<32x128xbf16, #tpu.memory_space<vmem>>, %arg8: memref<32x384xbf16, #tpu.memory_space<vmem>>, %arg9: memref<32x128xbf16, #tpu.memory_space<vmem>>, %arg10: memref<32x128xf32, #tpu.memory_space<vmem>>) attributes {dimension_semantics = [#tpu.dimension_semantics<parallel>, #tpu.dimension_semantics<parallel>], iteration_bounds = array<i64: 4, 1>, scalar_prefetch = 0 : i64, scratch_operands = 4 : i64, tpu.core_type = #tpu.core_type<tc>, window_params = [{transform_indices = @transform_0, window_bounds = array<i64: 4, 2, 4, 128>}, {pipeline_mode = #tpu.pipeline_mode<synchronous>, transform_indices = @transform_1, window_bounds = array<i64: 128, 384>}, {pipeline_mode = #tpu.pipeline_mode<synchronous>, transform_indices = @transform_2, window_bounds = array<i64: 128, 128>}, {pipeline_mode = #tpu.pipeline_mode<synchronous>, transform_indices = @transform_3, window_bounds = array<i64: 1, 128>}, {transform_indices = @transform_4, window_bounds = array<i64: 4, 2, 4, 128>}]} {
    %c0 = arith.constant 0 : index
    %c0_0 = arith.constant 0 : index
    %c0_1 = arith.constant 0 : index
    %c0_2 = arith.constant 0 : index
    %0 = vector.load %arg2[%c0, %c0_0, %c0_1, %c0_2] : memref<4x2x4x128xf32, #tpu.memory_space<vmem>>, vector<1x1x4x128xf32>
    %1 = vector.shape_cast %0 : vector<1x1x4x128xf32> to vector<4x128xf32>
    %2 = arith.truncf %1 : vector<4x128xf32> to vector<4x128xbf16>
    %c0_3 = arith.constant 0 : index
    %c0_4 = arith.constant 0 : index
    %3 = vector.load %arg7[%c0_3, %c0_4] : memref<32x128xbf16, #tpu.memory_space<vmem>>, vector<4x128xbf16>
    tpu.vector_store %arg7[%c0_3, %c0_4], %2 {strides = array<i32>} : memref<32x128xbf16, #tpu.memory_space<vmem>>, vector<4x128xbf16>,
    %c1 = arith.constant 1 : index
    %c0_5 = arith.constant 0 : index
    %c0_6 = arith.constant 0 : index
    %c0_7 = arith.constant 0 : index
    %4 = vector.load %arg2[%c1, %c0_5, %c0_6, %c0_7] : memref<4x2x4x128xf32, #tpu.memory_space<vmem>>, vector<1x1x4x128xf32>
    %5 = vector.shape_cast %4 : vector<1x1x4x128xf32> to vector<4x128xf32>
    %6 = arith.truncf %5 : vector<4x128xf32> to vector<4x128xbf16>
    %c4 = arith.constant 4 : index
    %c0_8 = arith.constant 0 : index
    %7 = vector.load %arg7[%c4, %c0_8] : memref<32x128xbf16, #tpu.memory_space<vmem>>, vector<4x128xbf16>
    tpu.vector_store %arg7[%c4, %c0_8], %6 {strides = array<i32>} : memref<32x128xbf16, #tpu.memory_space<vmem>>, vector<4x128xbf16>,
    %c2 = arith.constant 2 : index
    %c0_9 = arith.constant 0 : index
    %c0_10 = arith.constant 0 : index
    %c0_11 = arith.constant 0 : index
    %8 = vector.load %arg2[%c2, %c0_9, %c0_10, %c0_11] : memref<4x2x4x128xf32, #tpu.memory_space<vmem>>, vector<1x1x4x128xf32>
    %9 = vector.shape_cast %8 : vector<1x1x4x128xf32> to vector<4x128xf32>
    %10 = arith.truncf %9 : vector<4x128xf32> to vector<4x128xbf16>
    %c8 = arith.constant 8 : index
    %c0_12 = arith.constant 0 : index
    %11 = vector.load %arg7[%c8, %c0_12] : memref<32x128xbf16, #tpu.memory_space<vmem>>, vector<4x128xbf16>
    tpu.vector_store %arg7[%c8, %c0_12], %10 {strides = array<i32>} : memref<32x128xbf16, #tpu.memory_space<vmem>>, vector<4x128xbf16>,
    %c3 = arith.constant 3 : index
    %c0_13 = arith.constant 0 : index
    %c0_14 = arith.constant 0 : index
    %c0_15 = arith.constant 0 : index
    %12 = vector.load %arg2[%c3, %c0_13, %c0_14, %c0_15] : memref<4x2x4x128xf32, #tpu.memory_space<vmem>>, vector<1x1x4x128xf32>
    %13 = vector.shape_cast %12 : vector<1x1x4x128xf32> to vector<4x128xf32>
    %14 = arith.truncf %13 : vector<4x128xf32> to vector<4x128xbf16>
    %c12 = arith.constant 12 : index
    %c0_16 = arith.constant 0 : index
    %15 = vector.load %arg7[%c12, %c0_16] : memref<32x128xbf16, #tpu.memory_space<vmem>>, vector<4x128xbf16>
    tpu.vector_store %arg7[%c12, %c0_16], %14 {strides = array<i32>} : memref<32x128xbf16, #tpu.memory_space<vmem>>, vector<4x128xbf16>,
    %c0_17 = arith.constant 0 : index
    %c1_18 = arith.constant 1 : index
    %c0_19 = arith.constant 0 : index
    %c0_20 = arith.constant 0 : index
    %16 = vector.load %arg2[%c0_17, %c1_18, %c0_19, %c0_20] : memref<4x2x4x128xf32, #tpu.memory_space<vmem>>, vector<1x1x4x128xf32>
    %17 = vector.shape_cast %16 : vector<1x1x4x128xf32> to vector<4x128xf32>
    %18 = arith.truncf %17 : vector<4x128xf32> to vector<4x128xbf16>
    %c16 = arith.constant 16 : index
    %c0_21 = arith.constant 0 : index
    %19 = vector.load %arg7[%c16, %c0_21] : memref<32x128xbf16, #tpu.memory_space<vmem>>, vector<4x128xbf16>
    tpu.vector_store %arg7[%c16, %c0_21], %18 {strides = array<i32>} : memref<32x128xbf16, #tpu.memory_space<vmem>>, vector<4x128xbf16>,
    %c1_22 = arith.constant 1 : index
    %c1_23 = arith.constant 1 : index
    %c0_24 = arith.constant 0 : index
    %c0_25 = arith.constant 0 : index
    %20 = vector.load %arg2[%c1_22, %c1_23, %c0_24, %c0_25] : memref<4x2x4x128xf32, #tpu.memory_space<vmem>>, vector<1x1x4x128xf32>
    %21 = vector.shape_cast %20 : vector<1x1x4x128xf32> to vector<4x128xf32>
    %22 = arith.truncf %21 : vector<4x128xf32> to vector<4x128xbf16>
    %c20 = arith.constant 20 : index
    %c0_26 = arith.constant 0 : index
    %23 = vector.load %arg7[%c20, %c0_26] : memref<32x128xbf16, #tpu.memory_space<vmem>>, vector<4x128xbf16>
    tpu.vector_store %arg7[%c20, %c0_26], %22 {strides = array<i32>} : memref<32x128xbf16, #tpu.memory_space<vmem>>, vector<4x128xbf16>,
    %c2_27 = arith.constant 2 : index
    %c1_28 = arith.constant 1 : index
    %c0_29 = arith.constant 0 : index
    %c0_30 = arith.constant 0 : index
    %24 = vector.load %arg2[%c2_27, %c1_28, %c0_29, %c0_30] : memref<4x2x4x128xf32, #tpu.memory_space<vmem>>, vector<1x1x4x128xf32>
    %25 = vector.shape_cast %24 : vector<1x1x4x128xf32> to vector<4x128xf32>
    %26 = arith.truncf %25 : vector<4x128xf32> to vector<4x128xbf16>
    %c24 = arith.constant 24 : index
    %c0_31 = arith.constant 0 : index
    %27 = vector.load %arg7[%c24, %c0_31] : memref<32x128xbf16, #tpu.memory_space<vmem>>, vector<4x128xbf16>
    tpu.vector_store %arg7[%c24, %c0_31], %26 {strides = array<i32>} : memref<32x128xbf16, #tpu.memory_space<vmem>>, vector<4x128xbf16>,
    %c3_32 = arith.constant 3 : index
    %c1_33 = arith.constant 1 : index
    %c0_34 = arith.constant 0 : index
    %c0_35 = arith.constant 0 : index
    %28 = vector.load %arg2[%c3_32, %c1_33, %c0_34, %c0_35] : memref<4x2x4x128xf32, #tpu.memory_space<vmem>>, vector<1x1x4x128xf32>
    %29 = vector.shape_cast %28 : vector<1x1x4x128xf32> to vector<4x128xf32>
    %30 = arith.truncf %29 : vector<4x128xf32> to vector<4x128xbf16>
    %c28 = arith.constant 28 : index
    %c0_36 = arith.constant 0 : index
    %31 = vector.load %arg7[%c28, %c0_36] : memref<32x128xbf16, #tpu.memory_space<vmem>>, vector<4x128xbf16>
    tpu.vector_store %arg7[%c28, %c0_36], %30 {strides = array<i32>} : memref<32x128xbf16, #tpu.memory_space<vmem>>, vector<4x128xbf16>,
    %c0_37 = arith.constant 0 : index
    %c0_38 = arith.constant 0 : index
    %32 = vector.load %arg7[%c0_37, %c0_38] : memref<32x128xbf16, #tpu.memory_space<vmem>>, vector<32x128xbf16>
    %c0_39 = arith.constant 0 : index
    %c0_40 = arith.constant 0 : index
    %33 = vector.load %arg3[%c0_39, %c0_40] : memref<128x384xbf16, #tpu.memory_space<vmem>>, vector<128x384xbf16>
    %cst = arith.constant dense<0.000000e+00> : vector<32x384xf32>
    %34 = tpu.matmul %32, %33, %cst {dimension_numbers = #tpu.dot_dimension_numbers<[1], [0], [0], [1], [0, 0, 1, 1], [], []>} : vector<32x128xbf16>, vector<128x384xbf16>, vector<32x384xf32> -> vector<32x384xf32>
    %35 = arith.truncf %34 : vector<32x384xf32> to vector<32x384xbf16>
    %c0_41 = arith.constant 0 : index
    %c0_42 = arith.constant 0 : index
    %36 = vector.load %arg8[%c0_41, %c0_42] : memref<32x384xbf16, #tpu.memory_space<vmem>>, vector<32x384xbf16>
    tpu.vector_store %arg8[%c0_41, %c0_42], %35 {strides = array<i32>} : memref<32x384xbf16, #tpu.memory_space<vmem>>, vector<32x384xbf16>,
    %c0_43 = arith.constant 0 : index
    %c0_44 = arith.constant 0 : index
    %37 = vector.load %arg8[%c0_43, %c0_44] : memref<32x384xbf16, #tpu.memory_space<vmem>>, vector<16x64xbf16>
    %c0_45 = arith.constant 0 : index
    %c128 = arith.constant 128 : index
    %38 = vector.load %arg8[%c0_45, %c128] : memref<32x384xbf16, #tpu.memory_space<vmem>>, vector<16x64xbf16>
    %c0_46 = arith.constant 0 : index
    %c256 = arith.constant 256 : index
    %39 = vector.load %arg8[%c0_46, %c256] : memref<32x384xbf16, #tpu.memory_space<vmem>>, vector<16x64xbf16>
    %cst_47 = arith.constant dense<0.000000e+00> : vector<16x16xf32>
    %40 = tpu.matmul %37, %38, %cst_47 {dimension_numbers = #tpu.dot_dimension_numbers<[1], [1], [0], [0], [0, 0, 1, 0], [], []>} : vector<16x64xbf16>, vector<16x64xbf16>, vector<16x16xf32> -> vector<16x16xf32>
    %cst_48 = arith.constant dense<0xFF800000> : vector<16xf32>
    %41 = vector.multi_reduction <maximumf>, %40, %cst_48 [1] : vector<16x16xf32> to vector<16xf32>
    %42 = vector.shape_cast %41 : vector<16xf32> to vector<16x1xf32>
    %43 = vector.broadcast %42 : vector<16x1xf32> to vector<16x16xf32>
    %44 = arith.subf %40, %43 : vector<16x16xf32>
    %45 = math.exp %44 : vector<16x16xf32>
    %cst_49 = arith.constant dense<0.000000e+00> : vector<16xf32>
    %46 = vector.multi_reduction <add>, %45, %cst_49 [1] : vector<16x16xf32> to vector<16xf32>
    %47 = vector.shape_cast %46 : vector<16xf32> to vector<16x1xf32>
    %48 = arith.truncf %45 : vector<16x16xf32> to vector<16x16xbf16>
    %cst_50 = arith.constant dense<0.000000e+00> : vector<16x64xf32>
    %49 = tpu.matmul %48, %39, %cst_50 {dimension_numbers = #tpu.dot_dimension_numbers<[1], [0], [0], [1], [0, 0, 1, 1], [], []>} : vector<16x16xbf16>, vector<16x64xbf16>, vector<16x64xf32> -> vector<16x64xf32>
    %50 = tpu.reciprocal %47 {approx = true} : vector<16x1xf32> -> vector<16x1xf32>
    %51 = vector.broadcast %50 : vector<16x1xf32> to vector<16x64xf32>
    %52 = arith.mulf %49, %51 : vector<16x64xf32>
    %c0_51 = arith.constant 0 : index
    %c64 = arith.constant 64 : index
    %53 = vector.load %arg8[%c0_51, %c64] : memref<32x384xbf16, #tpu.memory_space<vmem>>, vector<16x64xbf16>
    %c0_52 = arith.constant 0 : index
    %c192 = arith.constant 192 : index
    %54 = vector.load %arg8[%c0_52, %c192] : memref<32x384xbf16, #tpu.memory_space<vmem>>, vector<16x64xbf16>
    %c0_53 = arith.constant 0 : index
    %c320 = arith.constant 320 : index
    %55 = vector.load %arg8[%c0_53, %c320] : memref<32x384xbf16, #tpu.memory_space<vmem>>, vector<16x64xbf16>
    %cst_54 = arith.constant dense<0.000000e+00> : vector<16x16xf32>
    %56 = tpu.matmul %53, %54, %cst_54 {dimension_numbers = #tpu.dot_dimension_numbers<[1], [1], [0], [0], [0, 0, 1, 0], [], []>} : vector<16x64xbf16>, vector<16x64xbf16>, vector<16x16xf32> -> vector<16x16xf32>
    %cst_55 = arith.constant dense<0xFF800000> : vector<16xf32>
    %57 = vector.multi_reduction <maximumf>, %56, %cst_55 [1] : vector<16x16xf32> to vector<16xf32>
    %58 = vector.shape_cast %57 : vector<16xf32> to vector<16x1xf32>
    %59 = vector.broadcast %58 : vector<16x1xf32> to vector<16x16xf32>
    %60 = arith.subf %56, %59 : vector<16x16xf32>
    %61 = math.exp %60 : vector<16x16xf32>
    %cst_56 = arith.constant dense<0.000000e+00> : vector<16xf32>
    %62 = vector.multi_reduction <add>, %61, %cst_56 [1] : vector<16x16xf32> to vector<16xf32>
    %63 = vector.shape_cast %62 : vector<16xf32> to vector<16x1xf32>
    %64 = arith.truncf %61 : vector<16x16xf32> to vector<16x16xbf16>
    %cst_57 = arith.constant dense<0.000000e+00> : vector<16x64xf32>
    %65 = tpu.matmul %64, %55, %cst_57 {dimension_numbers = #tpu.dot_dimension_numbers<[1], [0], [0], [1], [0, 0, 1, 1], [], []>} : vector<16x16xbf16>, vector<16x64xbf16>, vector<16x64xf32> -> vector<16x64xf32>
    %66 = tpu.reciprocal %63 {approx = true} : vector<16x1xf32> -> vector<16x1xf32>
    %67 = vector.broadcast %66 : vector<16x1xf32> to vector<16x64xf32>
    %68 = arith.mulf %65, %67 : vector<16x64xf32>
    %69 = tpu.concatenate %52, %68 in 1 : vector<16x64xf32>, vector<16x64xf32> -> vector<16x128xf32>
    %70 = arith.truncf %69 : vector<16x128xf32> to vector<16x128xbf16>
    %c0_58 = arith.constant 0 : index
    %c0_59 = arith.constant 0 : index
    %71 = vector.load %arg9[%c0_58, %c0_59] : memref<32x128xbf16, #tpu.memory_space<vmem>>, vector<16x128xbf16>
    tpu.vector_store %arg9[%c0_58, %c0_59], %70 {strides = array<i32>} : memref<32x128xbf16, #tpu.memory_space<vmem>>, vector<16x128xbf16>,
    %c16_60 = arith.constant 16 : index
    %c0_61 = arith.constant 0 : index
    %72 = vector.load %arg8[%c16_60, %c0_61] : memref<32x384xbf16, #tpu.memory_space<vmem>>, vector<16x64xbf16>
    %c16_62 = arith.constant 16 : index
    %c128_63 = arith.constant 128 : index
    %73 = vector.load %arg8[%c16_62, %c128_63] : memref<32x384xbf16, #tpu.memory_space<vmem>>, vector<16x64xbf16>
    %c16_64 = arith.constant 16 : index
    %c256_65 = arith.constant 256 : index
    %74 = vector.load %arg8[%c16_64, %c256_65] : memref<32x384xbf16, #tpu.memory_space<vmem>>, vector<16x64xbf16>
    %cst_66 = arith.constant dense<0.000000e+00> : vector<16x16xf32>
    %75 = tpu.matmul %72, %73, %cst_66 {dimension_numbers = #tpu.dot_dimension_numbers<[1], [1], [0], [0], [0, 0, 1, 0], [], []>} : vector<16x64xbf16>, vector<16x64xbf16>, vector<16x16xf32> -> vector<16x16xf32>
    %cst_67 = arith.constant dense<0xFF800000> : vector<16xf32>
    %76 = vector.multi_reduction <maximumf>, %75, %cst_67 [1] : vector<16x16xf32> to vector<16xf32>
    %77 = vector.shape_cast %76 : vector<16xf32> to vector<16x1xf32>
    %78 = vector.broadcast %77 : vector<16x1xf32> to vector<16x16xf32>
    %79 = arith.subf %75, %78 : vector<16x16xf32>
    %80 = math.exp %79 : vector<16x16xf32>
    %cst_68 = arith.constant dense<0.000000e+00> : vector<16xf32>
    %81 = vector.multi_reduction <add>, %80, %cst_68 [1] : vector<16x16xf32> to vector<16xf32>
    %82 = vector.shape_cast %81 : vector<16xf32> to vector<16x1xf32>
    %83 = arith.truncf %80 : vector<16x16xf32> to vector<16x16xbf16>
    %cst_69 = arith.constant dense<0.000000e+00> : vector<16x64xf32>
    %84 = tpu.matmul %83, %74, %cst_69 {dimension_numbers = #tpu.dot_dimension_numbers<[1], [0], [0], [1], [0, 0, 1, 1], [], []>} : vector<16x16xbf16>, vector<16x64xbf16>, vector<16x64xf32> -> vector<16x64xf32>
    %85 = tpu.reciprocal %82 {approx = true} : vector<16x1xf32> -> vector<16x1xf32>
    %86 = vector.broadcast %85 : vector<16x1xf32> to vector<16x64xf32>
    %87 = arith.mulf %84, %86 : vector<16x64xf32>
    %c16_70 = arith.constant 16 : index
    %c64_71 = arith.constant 64 : index
    %88 = vector.load %arg8[%c16_70, %c64_71] : memref<32x384xbf16, #tpu.memory_space<vmem>>, vector<16x64xbf16>
    %c16_72 = arith.constant 16 : index
    %c192_73 = arith.constant 192 : index
    %89 = vector.load %arg8[%c16_72, %c192_73] : memref<32x384xbf16, #tpu.memory_space<vmem>>, vector<16x64xbf16>
    %c16_74 = arith.constant 16 : index
    %c320_75 = arith.constant 320 : index
    %90 = vector.load %arg8[%c16_74, %c320_75] : memref<32x384xbf16, #tpu.memory_space<vmem>>, vector<16x64xbf16>
    %cst_76 = arith.constant dense<0.000000e+00> : vector<16x16xf32>
    %91 = tpu.matmul %88, %89, %cst_76 {dimension_numbers = #tpu.dot_dimension_numbers<[1], [1], [0], [0], [0, 0, 1, 0], [], []>} : vector<16x64xbf16>, vector<16x64xbf16>, vector<16x16xf32> -> vector<16x16xf32>
    %cst_77 = arith.constant dense<0xFF800000> : vector<16xf32>
    %92 = vector.multi_reduction <maximumf>, %91, %cst_77 [1] : vector<16x16xf32> to vector<16xf32>
    %93 = vector.shape_cast %92 : vector<16xf32> to vector<16x1xf32>
    %94 = vector.broadcast %93 : vector<16x1xf32> to vector<16x16xf32>
    %95 = arith.subf %91, %94 : vector<16x16xf32>
    %96 = math.exp %95 : vector<16x16xf32>
    %cst_78 = arith.constant dense<0.000000e+00> : vector<16xf32>
    %97 = vector.multi_reduction <add>, %96, %cst_78 [1] : vector<16x16xf32> to vector<16xf32>
    %98 = vector.shape_cast %97 : vector<16xf32> to vector<16x1xf32>
    %99 = arith.truncf %96 : vector<16x16xf32> to vector<16x16xbf16>
    %cst_79 = arith.constant dense<0.000000e+00> : vector<16x64xf32>
    %100 = tpu.matmul %99, %90, %cst_79 {dimension_numbers = #tpu.dot_dimension_numbers<[1], [0], [0], [1], [0, 0, 1, 1], [], []>} : vector<16x16xbf16>, vector<16x64xbf16>, vector<16x64xf32> -> vector<16x64xf32>
    %101 = tpu.reciprocal %98 {approx = true} : vector<16x1xf32> -> vector<16x1xf32>
    %102 = vector.broadcast %101 : vector<16x1xf32> to vector<16x64xf32>
    %103 = arith.mulf %100, %102 : vector<16x64xf32>
    %104 = tpu.concatenate %87, %103 in 1 : vector<16x64xf32>, vector<16x64xf32> -> vector<16x128xf32>
    %105 = arith.truncf %104 : vector<16x128xf32> to vector<16x128xbf16>
    %c16_80 = arith.constant 16 : index
    %c0_81 = arith.constant 0 : index
    %106 = vector.load %arg9[%c16_80, %c0_81] : memref<32x128xbf16, #tpu.memory_space<vmem>>, vector<16x128xbf16>
    tpu.vector_store %arg9[%c16_80, %c0_81], %105 {strides = array<i32>} : memref<32x128xbf16, #tpu.memory_space<vmem>>, vector<16x128xbf16>,
    %c0_82 = arith.constant 0 : index
    %c0_83 = arith.constant 0 : index
    %107 = vector.load %arg9[%c0_82, %c0_83] : memref<32x128xbf16, #tpu.memory_space<vmem>>, vector<32x128xbf16>
    %c0_84 = arith.constant 0 : index
    %c0_85 = arith.constant 0 : index
    %108 = vector.load %arg4[%c0_84, %c0_85] : memref<128x128xbf16, #tpu.memory_space<vmem>>, vector<128x128xbf16>
    %cst_86 = arith.constant dense<0.000000e+00> : vector<32x128xf32>
    %109 = tpu.matmul %107, %108, %cst_86 {dimension_numbers = #tpu.dot_dimension_numbers<[1], [0], [0], [1], [0, 0, 1, 1], [], []>} : vector<32x128xbf16>, vector<128x128xbf16>, vector<32x128xf32> -> vector<32x128xf32>
    %c0_87 = arith.constant 0 : index
    %c0_88 = arith.constant 0 : index
    %110 = vector.load %arg5[%c0_87, %c0_88] : memref<1x128xf32, #tpu.memory_space<vmem>>, vector<1x128xf32>
    %111 = vector.broadcast %110 : vector<1x128xf32> to vector<32x128xf32>
    %112 = arith.addf %109, %111 : vector<32x128xf32>
    %c0_89 = arith.constant 0 : index
    %c0_90 = arith.constant 0 : index
    %113 = vector.load %arg10[%c0_89, %c0_90] : memref<32x128xf32, #tpu.memory_space<vmem>>, vector<32x128xf32>
    tpu.vector_store %arg10[%c0_89, %c0_90], %112 {strides = array<i32>} : memref<32x128xf32, #tpu.memory_space<vmem>>, vector<32x128xf32>,
    %c0_91 = arith.constant 0 : index
    %c0_92 = arith.constant 0 : index
    %114 = vector.load %arg10[%c0_91, %c0_92] : memref<32x128xf32, #tpu.memory_space<vmem>>, vector<4x128xf32>
    %c0_93 = arith.constant 0 : index
    %c0_94 = arith.constant 0 : index
    %c0_95 = arith.constant 0 : index
    %c0_96 = arith.constant 0 : index
    %115 = vector.load %arg6[%c0_93, %c0_94, %c0_95, %c0_96] : memref<4x2x4x128xf32, #tpu.memory_space<vmem>>, vector<1x1x4x128xf32>
    %116 = vector.shape_cast %115 : vector<1x1x4x128xf32> to vector<4x128xf32>
    %117 = vector.shape_cast %114 : vector<4x128xf32> to vector<1x1x4x128xf32>
    tpu.vector_store %arg6[%c0_93, %c0_94, %c0_95, %c0_96], %117 {strides = array<i32>} : memref<4x2x4x128xf32, #tpu.memory_space<vmem>>, vector<1x1x4x128xf32>,
    %c4_97 = arith.constant 4 : index
    %c0_98 = arith.constant 0 : index
    %118 = vector.load %arg10[%c4_97, %c0_98] : memref<32x128xf32, #tpu.memory_space<vmem>>, vector<4x128xf32>
    %c1_99 = arith.constant 1 : index
    %c0_100 = arith.constant 0 : index
    %c0_101 = arith.constant 0 : index
    %c0_102 = arith.constant 0 : index
    %119 = vector.load %arg6[%c1_99, %c0_100, %c0_101, %c0_102] : memref<4x2x4x128xf32, #tpu.memory_space<vmem>>, vector<1x1x4x128xf32>
    %120 = vector.shape_cast %119 : vector<1x1x4x128xf32> to vector<4x128xf32>
    %121 = vector.shape_cast %118 : vector<4x128xf32> to vector<1x1x4x128xf32>
    tpu.vector_store %arg6[%c1_99, %c0_100, %c0_101, %c0_102], %121 {strides = array<i32>} : memref<4x2x4x128xf32, #tpu.memory_space<vmem>>, vector<1x1x4x128xf32>,
    %c8_103 = arith.constant 8 : index
    %c0_104 = arith.constant 0 : index
    %122 = vector.load %arg10[%c8_103, %c0_104] : memref<32x128xf32, #tpu.memory_space<vmem>>, vector<4x128xf32>
    %c2_105 = arith.constant 2 : index
    %c0_106 = arith.constant 0 : index
    %c0_107 = arith.constant 0 : index
    %c0_108 = arith.constant 0 : index
    %123 = vector.load %arg6[%c2_105, %c0_106, %c0_107, %c0_108] : memref<4x2x4x128xf32, #tpu.memory_space<vmem>>, vector<1x1x4x128xf32>
    %124 = vector.shape_cast %123 : vector<1x1x4x128xf32> to vector<4x128xf32>
    %125 = vector.shape_cast %122 : vector<4x128xf32> to vector<1x1x4x128xf32>
    tpu.vector_store %arg6[%c2_105, %c0_106, %c0_107, %c0_108], %125 {strides = array<i32>} : memref<4x2x4x128xf32, #tpu.memory_space<vmem>>, vector<1x1x4x128xf32>,
    %c12_109 = arith.constant 12 : index
    %c0_110 = arith.constant 0 : index
    %126 = vector.load %arg10[%c12_109, %c0_110] : memref<32x128xf32, #tpu.memory_space<vmem>>, vector<4x128xf32>
    %c3_111 = arith.constant 3 : index
    %c0_112 = arith.constant 0 : index
    %c0_113 = arith.constant 0 : index
    %c0_114 = arith.constant 0 : index
    %127 = vector.load %arg6[%c3_111, %c0_112, %c0_113, %c0_114] : memref<4x2x4x128xf32, #tpu.memory_space<vmem>>, vector<1x1x4x128xf32>
    %128 = vector.shape_cast %127 : vector<1x1x4x128xf32> to vector<4x128xf32>
    %129 = vector.shape_cast %126 : vector<4x128xf32> to vector<1x1x4x128xf32>
    tpu.vector_store %arg6[%c3_111, %c0_112, %c0_113, %c0_114], %129 {strides = array<i32>} : memref<4x2x4x128xf32, #tpu.memory_space<vmem>>, vector<1x1x4x128xf32>,
    %c16_115 = arith.constant 16 : index
    %c0_116 = arith.constant 0 : index
    %130 = vector.load %arg10[%c16_115, %c0_116] : memref<32x128xf32, #tpu.memory_space<vmem>>, vector<4x128xf32>
    %c0_117 = arith.constant 0 : index
    %c1_118 = arith.constant 1 : index
    %c0_119 = arith.constant 0 : index
    %c0_120 = arith.constant 0 : index
    %131 = vector.load %arg6[%c0_117, %c1_118, %c0_119, %c0_120] : memref<4x2x4x128xf32, #tpu.memory_space<vmem>>, vector<1x1x4x128xf32>
    %132 = vector.shape_cast %131 : vector<1x1x4x128xf32> to vector<4x128xf32>
    %133 = vector.shape_cast %130 : vector<4x128xf32> to vector<1x1x4x128xf32>
    tpu.vector_store %arg6[%c0_117, %c1_118, %c0_119, %c0_120], %133 {strides = array<i32>} : memref<4x2x4x128xf32, #tpu.memory_space<vmem>>, vector<1x1x4x128xf32>,
    %c20_121 = arith.constant 20 : index
    %c0_122 = arith.constant 0 : index
    %134 = vector.load %arg10[%c20_121, %c0_122] : memref<32x128xf32, #tpu.memory_space<vmem>>, vector<4x128xf32>
    %c1_123 = arith.constant 1 : index
    %c1_124 = arith.constant 1 : index
    %c0_125 = arith.constant 0 : index
    %c0_126 = arith.constant 0 : index
    %135 = vector.load %arg6[%c1_123, %c1_124, %c0_125, %c0_126] : memref<4x2x4x128xf32, #tpu.memory_space<vmem>>, vector<1x1x4x128xf32>
    %136 = vector.shape_cast %135 : vector<1x1x4x128xf32> to vector<4x128xf32>
    %137 = vector.shape_cast %134 : vector<4x128xf32> to vector<1x1x4x128xf32>
    tpu.vector_store %arg6[%c1_123, %c1_124, %c0_125, %c0_126], %137 {strides = array<i32>} : memref<4x2x4x128xf32, #tpu.memory_space<vmem>>, vector<1x1x4x128xf32>,
    %c24_127 = arith.constant 24 : index
    %c0_128 = arith.constant 0 : index
    %138 = vector.load %arg10[%c24_127, %c0_128] : memref<32x128xf32, #tpu.memory_space<vmem>>, vector<4x128xf32>
    %c2_129 = arith.constant 2 : index
    %c1_130 = arith.constant 1 : index
    %c0_131 = arith.constant 0 : index
    %c0_132 = arith.constant 0 : index
    %139 = vector.load %arg6[%c2_129, %c1_130, %c0_131, %c0_132] : memref<4x2x4x128xf32, #tpu.memory_space<vmem>>, vector<1x1x4x128xf32>
    %140 = vector.shape_cast %139 : vector<1x1x4x128xf32> to vector<4x128xf32>
    %141 = vector.shape_cast %138 : vector<4x128xf32> to vector<1x1x4x128xf32>
    tpu.vector_store %arg6[%c2_129, %c1_130, %c0_131, %c0_132], %141 {strides = array<i32>} : memref<4x2x4x128xf32, #tpu.memory_space<vmem>>, vector<1x1x4x128xf32>,
    %c28_133 = arith.constant 28 : index
    %c0_134 = arith.constant 0 : index
    %142 = vector.load %arg10[%c28_133, %c0_134] : memref<32x128xf32, #tpu.memory_space<vmem>>, vector<4x128xf32>
    %c3_135 = arith.constant 3 : index
    %c1_136 = arith.constant 1 : index
    %c0_137 = arith.constant 0 : index
    %c0_138 = arith.constant 0 : index
    %143 = vector.load %arg6[%c3_135, %c1_136, %c0_137, %c0_138] : memref<4x2x4x128xf32, #tpu.memory_space<vmem>>, vector<1x1x4x128xf32>
    %144 = vector.shape_cast %143 : vector<1x1x4x128xf32> to vector<4x128xf32>
    %145 = vector.shape_cast %142 : vector<4x128xf32> to vector<1x1x4x128xf32>
    tpu.vector_store %arg6[%c3_135, %c1_136, %c0_137, %c0_138], %145 {strides = array<i32>} : memref<4x2x4x128xf32, #tpu.memory_space<vmem>>, vector<1x1x4x128xf32>,
    return
  }
  func.func @transform_0(%arg0: i32, %arg1: i32) -> (i32, i32, i32, i32) {
    %c0_i32 = arith.constant 0 : i32
    %c0_i32_0 = arith.constant 0 : i32
    %c0_i32_1 = arith.constant 0 : i32
    return %arg0, %arg1, %c0_i32, %c0_i32_0 : i32, i32, i32, i32
  }
  func.func @transform_1(%arg0: i32, %arg1: i32) -> (i32, i32) {
    %c0_i32 = arith.constant 0 : i32
    %c0_i32_0 = arith.constant 0 : i32
    %c0_i32_1 = arith.constant 0 : i32
    return %c0_i32, %c0_i32_0 : i32, i32
  }
  func.func @transform_2(%arg0: i32, %arg1: i32) -> (i32, i32) {
    %c0_i32 = arith.constant 0 : i32
    %c0_i32_0 = arith.constant 0 : i32
    %c0_i32_1 = arith.constant 0 : i32
    return %c0_i32, %c0_i32_0 : i32, i32
  }
  func.func @transform_3(%arg0: i32, %arg1: i32) -> (i32, i32) {
    %c0_i32 = arith.constant 0 : i32
    %c0_i32_0 = arith.constant 0 : i32
    %c0_i32_1 = arith.constant 0 : i32
    return %c0_i32, %c0_i32_0 : i32, i32
  }
  func.func @transform_4(%arg0: i32, %arg1: i32) -> (i32, i32, i32, i32) {
    %c0_i32 = arith.constant 0 : i32
    %c0_i32_0 = arith.constant 0 : i32
    %c0_i32_1 = arith.constant 0 : i32
    return %arg0, %arg1, %c0_i32, %c0_i32_0 : i32, i32, i32, i32
  }
}

</mosaic_0001>

<bundles_post_ra>
// kernel: tpu_custom_call.1
= control target key start
LH: loop header
LB: loop body
LE: loop exit
PB: predicated region body
PF: predicated region fallthrough
CT: control target
= control target key end

     0   :  { %s2402_s0 = inlined_call_operand.hbm [shape: f32[16,2,4,128], index: 0, kind: input, shape index: {}]   ;;  %s2403_s1 = inlined_call_operand.hbm [shape: bf16[128,384], index: 1, kind: input, shape index: {}]   ;;  %s2404_s2 = inlined_call_operand.hbm [shape: bf16[128,128], index: 2, kind: input, shape index: {}]   ;;  %s2405_s3 = inlined_call_operand.hbm [shape: f32[1,128], index: 3, kind: input, shape index: {}]   ;;  %s2406_s4 = inlined_call_operand.hbm [shape: f32[16,2,4,128], index: 4, kind: output, shape index: {}]  }
   0x1   :  { %2411 = sst [smem:[#allocation19_spill]] %s2403_s1 }
   0x2   :  { %9 = vsyncpa [#allocation7], 0 }
   0x3   :  { %11 = vsyncpa [#allocation7 + $0x1], 0 }
   0x4   :  { %12 = vsyncpa [#allocation10], 0 }
   0x5   :  { %13 = vsyncpa [#allocation13], 0 }
   0x6   :  { %14 = vsyncpa [#allocation8], 0 }
   0x7   :  { %16 = vsyncpa [#allocation8 + $0x1], 0  ;;  %s2032_s15 = smov 0   ;;  %s2034_s16 = smov 0  }
   0x8   :  { %s2036_s17 = smov 0   ;;  %s2038_s18 = smov 0  }
   0x9   :  { %s2040_s19 = smov 0   ;;  %s2042_s20 = smov 0  }
   0xa LB: > { %s1397_s21 = sadd.s32 4294967295, %s1991_s20   ;;  %s1398_s22 = sadd.s32 4294967294, %s1991_s20   ;;  %s1991_s20 = sphi %s2042_s20, %s22_s20   ;;  %s1987_s19 = sphi %s2040_s19, %s2432_s19   ;;  %s1983_s18 = sphi %s2038_s18, %s2431_s18   ;;  %s1979_s17 = sphi %s2036_s17, %s2430_s17   ;;  %s1975_s16 = sphi %s2034_s16, %s2429_s16   ;;  %s1971_s15 = sphi %s2032_s15, %s2428_s15  }
   0xb   : > { %p56_p0 = scmp.ne.s32.totalorder %s1975_s16, %s1971_s15  ;;  %p2066_p1 = scmp.eq.s32.totalorder %s1397_s21, 0 }
   0xc   : > { %p2070_p2 = scmp.eq.s32.totalorder %s1397_s21, 3  ;;  %p151_p3 = scmp.eq.s32.totalorder %s1398_s22, 3 }
   0xd   : > { %s2412_s23 = scalar_select %p2066_p1, 1, 0 }
   0xe   : > { %s2413_s24 = scalar_select %p2070_p2, 1, 0 }
   0xf   : > { %p2076_p4 = por %p2066_p1, %p56_p0  ;;  %p1399_p5 = scmp.ge.s32.totalorder %s1991_s20, 1 }
  0x10   : > { %p2081_p6 = por %p151_p3, %p56_p0  ;;  %p158_p7 = scmp.lt.s32.totalorder %s1991_s20, 5 }
  0x11   : > { %s2414_s25 = scalar_select %p2076_p4, 1, 0 }
  0x12   : > { %s2415_s26 = scalar_select %p2081_p6, 1, 0 }
  0x13   : > { %p2086_p8 = pnand %p1399_p5, %p158_p7  ;;  %s1993_s28 = smov [#allocation9]  }
  0x14   : > { %s170_s29 = sshll.u32 %s1993_s28, 4  ;;  %s1994_s5 = smov [#allocation11]   ;;  %s171_s29 = int_to_ptr.vmem [resolvable:$true] %s170_s29 }
  0x15   : > { %s2416_s27 = scalar_select %p2086_p8, 1, 0 }
  0x16   : > { %p1619_p9 = pneg %p2086_p8  ;;  %s183_s6 = sshll.u32 %s1994_s5, 4  ;;  %s2098_s6 = int_to_ptr.vmem [resolvable:$true] %s183_s6 }
  0x17   : > { %s2418_s1 = sld [smem:[#allocation19_spill]] }
  0x18   : > { %p2094_p10 = pnand %p1619_p9, %p2066_p1 }
  0x1a   : > { %p2108_p12 = pneg %p2094_p10 }
  0x1d   : > { %s1787_s9 = scalar_lea.hbm %s2418_s1, 3072 }
  0x1e   : > { %p1788_p11 = scmp.ne.s32.totalorder %s2418_s1, %s1787_s9  ;;  %p1794_p3 = scmp.lt.u32.totalorder %s1787_s9, %s2418_s1 }
  0x20   : > { %p1790_p13 = pnand %p2108_p12, %p1788_p11 }
  0x22   : > { %p1791_p0 = pneg %p1790_p13 }
  0x24   : > { %p1796_p5 = pnand %p1794_p3, %p1791_p0 }
  0x26   : > { %1799 = shalt.err (!%p1796_p5)
}
  0x27   : > { %s1800_s21 = scalar_lea.vmem %s171_s29, 3072  ;;  %p1808_p1 = scmp.lt.s32.totalorder %s171_s29, %s171_s29 }
  0x28   : > { %p1801_p7 = scmp.ne.s32.totalorder %s171_s29, %s1800_s21  ;;  %p1809_p4 = scmp.lt.s32.totalorder %s1800_s21, %s1800_s21 }
  0x2a   : > { %p1803_p9 = pnand %p1801_p7, %p2108_p12  ;;  %p1810_p8 = por %p1809_p4, %p1808_p1 }
  0x2c   : > { %p1804_p6 = pneg %p1803_p9 }
  0x2e   : > { %p1811_p2 = pnand %p1810_p8, %p1804_p6 }
  0x30   : > { %1814 = shalt.err (!%p1811_p2)
}
  0x31   : > { %s1995_s22 = smov 192   ;;  %s1996_s28 = smov 12  }
  0x32   : > { %1622 = dma.hbm_to_vmem [thread:$0]  (!%p2094_p10), %s2418_s1, 3072, %s171_s29, [#allocation10], %s1995_s22, %s1995_s22, %s1996_s28  }
  0x33   : > { %s1815_s10 = scalar_lea.hbm %s2404_s2, 1024 }
  0x34   : > { %p1816_p11 = scmp.ne.s32.totalorder %s2404_s2, %s1815_s10  ;;  %p1822_p4 = scmp.lt.u32.totalorder %s1815_s10, %s2404_s2 }
  0x36   : > { %p1818_p1 = pnand %p1816_p11, %p2108_p12 }
  0x38   : > { %p1819_p2 = pneg %p1818_p1 }
  0x3a   : > { %p1824_p6 = pnand %p1822_p4, %p1819_p2 }
  0x3c   : > { %1827 = shalt.err (!%p1824_p6)
}
  0x3d   : > { %s1828_s29 = scalar_lea.vmem %s2098_s6, 1024  ;;  %p1836_p3 = scmp.lt.s32.totalorder %s2098_s6, %s2098_s6 }
  0x3e   : > { %p1829_p8 = scmp.ne.s32.totalorder %s2098_s6, %s1828_s29  ;;  %p1837_p5 = scmp.lt.s32.totalorder %s1828_s29, %s1828_s29 }
  0x40   : > { %p1831_p13 = pnand %p1829_p8, %p2108_p12  ;;  %p1838_p7 = por %p1837_p5, %p1836_p3 }
  0x42   : > { %p1832_p0 = pneg %p1831_p13 }
  0x44   : > { %p1839_p9 = pnand %p1838_p7, %p1832_p0 }
  0x46   : > { %1842 = shalt.err (!%p1839_p9)
}
  0x47   : > { %s1997_s22 = smov 64   ;;  %s1998_s28 = smov 4  }
  0x48   : > { %1625 = dma.hbm_to_vmem [thread:$0]  (!%p2094_p10), %s2404_s2, 1024, %s2098_s6, [#allocation10], %s1997_s22, %s1997_s22, %s1998_s28  }
  0x49   : > { %s1999_s8 = smov [#allocation12]   ;;  %s1843_s13 = scalar_lea.hbm %s2405_s3, 16 }
  0x4a   : > { %s197_s9 = sshll.u32 %s1999_s8, 4  ;;  %p1844_p11 = scmp.ne.s32.totalorder %s2405_s3, %s1843_s13  ;;  %s198_s9 = int_to_ptr.vmem [resolvable:$true] %s197_s9 }
  0x4b   : > { %p1850_p4 = scmp.lt.u32.totalorder %s1843_s13, %s2405_s3 }
  0x4c   : > { %p1846_p1 = pnand %p1844_p11, %p2108_p12 }
  0x4e   : > { %p1847_p2 = pneg %p1846_p1 }
  0x50   : > { %p1852_p6 = pnand %p1850_p4, %p1847_p2 }
  0x52   : > { %1855 = shalt.err (!%p1852_p6)
}
  0x53   : > { %s1856_s6 = scalar_lea.vmem %s198_s9, 16  ;;  %s1863_s5 = scalar_lea.vmem %s198_s9, 32 }
  0x54   : > { %p1857_p8 = scmp.ne.s32.totalorder %s198_s9, %s1856_s6  ;;  %p1864_p3 = scmp.lt.s32.totalorder %s198_s9, %s198_s9 }
  0x55   : > { %p1865_p5 = scmp.lt.s32.totalorder %s1863_s5, %s1856_s6 }
  0x56   : > { %p1859_p13 = pnand %p1857_p8, %p2108_p12 }
  0x57   : > { %p1866_p7 = por %p1865_p5, %p1864_p3 }
  0x58   : > { %p1860_p0 = pneg %p1859_p13 }
  0x5a   : > { %p1867_p9 = pnand %p1866_p7, %p1860_p0 }
  0x5c   : > { %1870 = shalt.err (!%p1867_p9)
}
  0x5d   : > { %1628 = dma.hbm_to_vmem [thread:$0]  (!%p2094_p10), %s2405_s3, 16, %s198_s9, [#allocation13]  }
  0x5e   : > { %s34_s1 = sadd.s32 1, %s1987_s19  ;;  %s43_s12 = sadd.s32 1, %s1979_s17 }
  0x5f   : > { %p36_p12 = scmp.ge.s32.totalorder %s34_s1, 4  ;;  %p50_p11 = scmp.ne.s32.totalorder %s1979_s17, %s1975_s16 }
  0x60   : > { %p51_p1 = scmp.eq.s32.totalorder %s1991_s20, 0  ;;  %p2421_p4 = scmp.ne.s32.totalorder %s2413_s24, 0 }
  0x61   : > { %s2434_s1 = smov (%p36_p12, %s34_s1), 0  ;;  %p1640_p10 = scmp.lt.s32.totalorder %s1991_s20, 4 }
  0x62   : > { %p2175_p2 = por %p51_p1, %p50_p11  ;;  %p2181_p6 = por %p2421_p4, %p50_p11 }
  0x63   : > { %s38_s11 = ssub.s32 %s1987_s19, %s2434_s1  ;;  %s208_s9 = sand.u32 1, %s1979_s17  }
  0x64   : > { %p41_p8 = scmp.eq.s32.totalorder %s38_s11, 0  ;;  %s1404_s13 = sshll.u32 %s208_s9, 5 }
  0x65   : > { %s1476_s21 = sshll.u32 %s1987_s19, 9  ;;  %s212_s24 = scalar_lea.vmem [#allocation6], %s1404_s13 }
  0x66   : > { %s2190_s14 = scalar_select %p41_p8, %s1979_s17, %s43_s12  }
  0x67   : > { %s2196_s5 = scalar_lea.hbm %s2402_s0, %s1476_s21  ;;  %s222_s7 = sshll.u32 %s212_s24, 4  ;;  %s2198_s7 = int_to_ptr.vmem [resolvable:$true] %s222_s7 }
  0x68   : > { %p2202_p13 = pnand %p1640_p10, %p2175_p2  ;;  %s2206_s12 = scalar_lea.sflag [#allocation7], %s208_s9 }
  0x69   : > { %s1871_s11 = scalar_lea.hbm %s2196_s5, 512  ;;  %s1876_s30 = scalar_lea.hbm %s2402_s0, 2048 }
  0x6a   : > { %p1872_p0 = scmp.ne.s32.totalorder %s2196_s5, %s1871_s11  ;;  %p1873_p3 = pneg %p2202_p13 }
  0x6b   : > { %p1877_p9 = scmp.lt.u32.totalorder %s2196_s5, %s2402_s0  ;;  %p1878_p12 = scmp.lt.u32.totalorder %s1876_s30, %s1871_s11 }
  0x6c   : > { %p1874_p5 = pnand %p1873_p3, %p1872_p0  ;;  %p1880_p1 = scmp.lt.u32.totalorder %s1871_s11, %s2196_s5 }
  0x6d   : > { %p1879_p11 = por %p1878_p12, %p1877_p9 }
  0x6e   : > { %p1875_p7 = pneg %p1874_p5 }
  0x6f   : > { %p1881_p2 = por %p1880_p1, %p1879_p11 }
  0x71   : > { %p1882_p4 = pnand %p1881_p2, %p1875_p7 }
  0x73   : > { %1885 = shalt.err (!%p1882_p4)
}
  0x74   : > { %s1886_s9 = scalar_lea.vmem %s2198_s7, 512  ;;  %s2000_s24 = smov [#allocation6]  }
  0x75   : > { %p1887_p10 = scmp.ne.s32.totalorder %s2198_s7, %s1886_s9  ;;  %s1891_s13 = sshll.u32 %s2000_s24, 4  ;;  %s1892_s13 = int_to_ptr.vmem [resolvable:$false] %s1891_s13 }
  0x76   : > { %s1893_s21 = scalar_lea.vmem %s1892_s13, 1024  ;;  %p1894_p5 = scmp.lt.s32.totalorder %s2198_s7, %s1892_s13 }
  0x77   : > { %p1889_p8 = pnand %p1887_p10, %p1873_p3  ;;  %p1895_p9 = scmp.lt.s32.totalorder %s1893_s21, %s1886_s9 }
  0x79   : > { %p1890_p0 = pneg %p1889_p8  ;;  %p1896_p12 = por %p1895_p9, %p1894_p5 }
  0x7b   : > { %p1897_p11 = pnand %p1896_p12, %p1890_p0 }
  0x7d   : > { %1900 = shalt.err (!%p1897_p11)
}
  0x7e   : > { %1632 = dma.hbm_to_vmem [thread:$0]  (!%p2202_p13), %s2196_s5, 512, %s2198_s7, %s2206_s12, %s1997_s22, %s1997_s22, %s1998_s28  }
  0x7f   : > { %p2424_p3 = scmp.ne.s32.totalorder %s2416_s27, 0 }
  0x80   : > { %s2240_s11 = sand.u32 (!%p2424_p3), 1, %s1975_s16   ;;  %p2425_p7 = scmp.ne.s32.totalorder (!%p2424_p3), %s2414_s25, 0 }
  0x81   : > { %234 = sbr.rel (%p2424_p3) target bundleno = 1488 (0x5d0), region = 36  ;;  %s1409_s30 = sshll.u32 (!%p2424_p3), %s2240_s11, 5 }
  0x82   : > { %s237_s29 = scalar_lea.sflag (!%p2424_p3), [#allocation7], %s2240_s11  ;;  %s2246_s8 = scalar_lea.vmem (!%p2424_p3), [#allocation6], %s1409_s30 }
  0x88   : > { %1954 = dma.done.wait (%p2425_p7), %s237_s29, 512  }
  0x89   : > { %1956 = vsyncadd (%p2425_p7), %s237_s29, 4294966784  ;;  %p2426_p13 = scmp.ne.s32.totalorder %s2412_s23, 0 }
  0x8b   : > { %1958 = dma.done.wait (%p2426_p13), [#allocation10], 4096  }
  0x8c   : > { %1960 = vsyncadd (%p2426_p13), [#allocation10], 4294963200 }
  0x8d   : > { %1962 = dma.done.wait (%p2426_p13), [#allocation13], 16  }
  0x8e   : > { %1964 = vsyncadd (%p2426_p13), [#allocation13], 4294967280  ;;  %v2001_v0 = vmov 0   ;;  %v1715_v1 = vld [vmem:[#allocation9 + $0x4] ss:$12 sps:$4 sm:$0xff]   ;;  %v2002_v41 = vmov 0.0  }
  0x8f   : > { %525 = vmatprep.mubr.bf16.mxu0 %v2001_v0  ;;  %v1717_v2 = vld [vmem:[#allocation9] ss:$12 sps:$4 sm:$0xff]   ;;  %493 = vmatprep.subr.bf16.mxu0 %v1715_v1  ;;  %v1718_v3 = vld [vmem:[#allocation9 + $0x1c] ss:$12 sps:$4 sm:$0xff]   ;;  %v1720_v4 = vld [vmem:[#allocation9 + $0x18] ss:$12 sps:$4 sm:$0xff]  }
  0x90   : > { %494 = vmatpush1.bf16.msra.mxu0 %v1717_v2  ;;  %v1721_v5 = vld [vmem:[#allocation9 + $0x34] ss:$12 sps:$4 sm:$0xff]   ;;  %v1723_v6 = vld [vmem:[#allocation9 + $0x30] ss:$12 sps:$4 sm:$0xff]   ;;  %v1724_v7 = vld [vmem:[#allocation9 + $0x4c] ss:$12 sps:$4 sm:$0xff]  }
  0x91   : > { %495 = vmatprep.subr.bf16.mxu0 %v1718_v3  ;;  %v1726_v8 = vld [vmem:[#allocation9 + $0x48] ss:$12 sps:$4 sm:$0xff]   ;;  %v1727_v9 = vld [vmem:[#allocation9 + $0x64] ss:$12 sps:$4 sm:$0xff]   ;;  %v282_v10 = vld [vmem:[%s2246_s8] sm:$0xf] }
  0x92   : > { %v283_v11 = vpack.c.bf16 %v282_v10, %v282_v10  ;;  %v1414_v12 = vld [vmem:[%s2246_s8 + $0x8] sm:$0xf]  ;;  %v1415_v13 = vld [vmem:[%s2246_s8 + $0x10] sm:$0xf]  ;;  %v1416_v14 = vld [vmem:[%s2246_s8 + $0x18] sm:$0xf] }
  0x93   : > { %v287_v15 = vpack.c.bf16 %v1414_v12, %v1414_v12  ;;  %v294_v16 = vpack.c.bf16 %v1415_v13, %v1415_v13  ;;  %v301_v17 = vpack.c.bf16 %v1416_v14, %v1416_v14  ;;  %v1417_v18 = vld [vmem:[%s2246_s8 + $0x4] sm:$0xf]  ;;  %v1418_v19 = vld [vmem:[%s2246_s8 + $0xc] sm:$0xf]  ;;  %v1419_v20 = vld [vmem:[%s2246_s8 + $0x14] sm:$0xf] }
  0x94   : > { %496 = vmatpush1.bf16.msra.mxu0 %v1720_v4  ;;  %v1729_v21 = vld [vmem:[#allocation9 + $0x60] ss:$12 sps:$4 sm:$0xff]   ;;  %284 = vst [vmem:[#allocation2] sm:$0x3] %v283_v11  ;;  %v308_v22 = vpack.c.bf16 %v1417_v18, %v1417_v18  ;;  %v312_v23 = vpack.c.bf16 %v1418_v19, %v1418_v19  ;;  %v319_v24 = vpack.c.bf16 %v1419_v20, %v1419_v20  ;;  %v1420_v25 = vld [vmem:[%s2246_s8 + $0x1c] sm:$0xf] }
  0x95   : > { %497 = vmatprep.subr.bf16.mxu0 %v1721_v5  ;;  %v1730_v26 = vld [vmem:[#allocation9 + $0x7c] ss:$12 sps:$4 sm:$0xff]   ;;  %v289_v27 = vrot.slane %v287_v15, 6  ;;  %v296_v28 = vrot.slane %v294_v16, 4  ;;  %v303_v29 = vrot.slane %v301_v17, 2  ;;  %v326_v30 = vpack.c.bf16 %v1420_v25, %v1420_v25  ;;  %s2004_s23 = smov 64  }
  0x96   : > { %309 = vst [vmem:[#allocation2 + $0x8] sm:$0x3] %v308_v22  ;;  %v314_v31 = vrot.slane %v312_v23, 6  ;;  %v321_v32 = vrot.slane %v319_v24, 4  ;;  %v1732_v34 = vld [vmem:[#allocation9 + $0x78] ss:$12 sps:$4 sm:$0xff]  }
  0x97   : > { %291 = vst [vmem:[#allocation2] sm:$0xc] %v289_v27  ;;  %298 = vst [vmem:[#allocation2] sm:$0x30] %v296_v28  ;;  %v328_v33 = vrot.slane %v326_v30, 2  ;;  %vm2003_vm0 = vmmov 0  }
  0x98   : > { %498 = vmatpush1.bf16.msra.mxu0 %v1723_v6  ;;  %305 = vst [vmem:[#allocation2] sm:$0xc0] %v303_v29  ;;  %316 = vst [vmem:[#allocation2 + $0x8] sm:$0xc] %v314_v31  ;;  %v1733_v35 = vld [vmem:[#allocation9 + $0x94] ss:$12 sps:$4 sm:$0xff]  }
  0x99   : > { %499 = vmatprep.subr.bf16.mxu0 %v1724_v7  ;;  %323 = vst [vmem:[#allocation2 + $0x8] sm:$0x30] %v321_v32  ;;  %330 = vst [vmem:[#allocation2 + $0x8] sm:$0xc0] %v328_v33  ;;  %v1735_v36 = vld [vmem:[#allocation9 + $0x90] ss:$12 sps:$4 sm:$0xff]  }
  0x9a   : > { %v1736_v37 = vld [vmem:[#allocation9 + $0xac] ss:$12 sps:$4 sm:$0xff]   ;;  %v1738_v39 = vld [vmem:[#allocation9 + $0xa8] ss:$12 sps:$4 sm:$0xff]   ;;  %v1742_v45 = vld [vmem:[#allocation9 + $0x50] ss:$12 sps:$4 sm:$0xff]  }
  0x9b   : > { %v1739_v42 = vld [vmem:[#allocation9 + $0x8] ss:$12 sps:$4 sm:$0xff]   ;;  %v1740_v43 = vld [vmem:[#allocation9 + $0x20] ss:$12 sps:$4 sm:$0xff]   ;;  %v1741_v44 = vld [vmem:[#allocation9 + $0x38] ss:$12 sps:$4 sm:$0xff]  }
  0x9c   : > { %500 = vmatpush1.bf16.msra.mxu0 %v1726_v8  ;;  %1515 = vmatprep.subr.bf16.mxu1 %v1739_v42  ;;  %v1743_v46 = vld [vmem:[#allocation9 + $0x68] ss:$12 sps:$4 sm:$0xff]   ;;  %v1744_v47 = vld [vmem:[#allocation9 + $0x80] ss:$12 sps:$4 sm:$0xff]   ;;  %v1745_v48 = vld [vmem:[#allocation9 + $0x98] ss:$12 sps:$4 sm:$0xff]  }
  0x9d   : > { %501 = vmatprep.subr.bf16.mxu0 %v1727_v9  ;;  %1516 = vmatpush3.bf16.msra.mxu1 %v1739_v42  ;;  %v1746_v49 = vld [vmem:[#allocation9 + $0xb0] ss:$12 sps:$4 sm:$0xff]   ;;  %vm610_vm1 = vcmask 523264   ;;  %vm658_vm2 = vcmask 130048   ;;  %s1478_s25 = sshll.u32 %s1983_s18, 9  ;;  %s276_s27 = scalar_lea.vmem [#allocation14], %s1409_s30 }
  0x9e   : > { %1517 = vmatprep.subr.bf16.mxu1 %v1740_v43  ;;  %s1281_s22 = sshll.u32 %s276_s27, 4  ;;  %s2350_s7 = scalar_lea.hbm %s2406_s4, %s1478_s25  ;;  %s2352_s22 = int_to_ptr.vmem [resolvable:$true] %s1281_s22 }
  0x9f   : > { %v331_v38 = vld [vmem:[#allocation2] sm:$0xff]  ;;  %s1265_s18 = scalar_lea.sflag [#allocation8], %s2240_s11  ;;  %s1901_s12 = scalar_lea.vmem %s2352_s22, 512 }
  0xa0   : > { %502 = vmatpush1.bf16.msra.mxu0 %v1729_v21  ;;  %1531 = vmatprep.mubr.bf16.mxu1 %v331_v38  ;;  %v332_v40 = vld [vmem:[#allocation2 + $0x8] sm:$0xff]  ;;  %p1902_p1 = scmp.ne.s32.totalorder %s2352_s22, %s1901_s12  ;;  %s2005_s6 = smov [#allocation14]  }
  0xa1   : > { %503 = vmatprep.subr.bf16.mxu0 %v1730_v26  ;;  %1518 = vmatpush3.bf16.msra.mxu1 %v1740_v43  ;;  %s1905_s9 = sshll.u32 %s2005_s6, 4  ;;  %s1906_s9 = int_to_ptr.vmem [resolvable:$false] %s1905_s9 }
  0xa2   : > { %1519 = vmatprep.subr.bf16.mxu1 %v1741_v44  ;;  %p1903_p2 = pnand %p1902_p1, %p2181_p6  ;;  %s1907_s24 = scalar_lea.vmem %s1906_s9, 1024 }
  0xa3   : > { %p1908_p10 = scmp.lt.s32.totalorder %s2352_s22, %s1906_s9  ;;  %p1909_p8 = scmp.lt.s32.totalorder %s1907_s24, %s1901_s12 }
  0xa4   : > { %504 = vmatpush1.bf16.msra.mxu0 %v1732_v34  ;;  %p1904_p4 = pneg %p1903_p2 }
  0xa5   : > { %505 = vmatprep.subr.bf16.mxu0 %v1733_v35  ;;  %1520 = vmatpush3.bf16.msra.mxu1 %v1741_v44  ;;  %p1910_p0 = por %p1909_p8, %p1908_p10 }
  0xa6   : > { %1521 = vmatprep.subr.bf16.mxu1 %v1742_v45 }
  0xa7   : > { %p1911_p5 = pnand %p1910_p0, %p1904_p4 }
  0xa8   : > { %506 = vmatpush1.bf16.msra.mxu0 %v1735_v36 }
  0xa9   : > { %507 = vmatprep.subr.bf16.mxu0 %v1736_v37  ;;  %1522 = vmatpush3.bf16.msra.mxu1 %v1742_v45 }
  0xaa   : > { %1523 = vmatprep.subr.bf16.mxu1 %v1743_v46 }
  0xac   : > { %508 = vmatpush1.bf16.msra.mxu0 %v1738_v39 }
  0xad   : > { %1535 = vmatprep.subr.bf16.mxu0 %v2002_v41  ;;  %1524 = vmatpush3.bf16.msra.mxu1 %v1743_v46 }
  0xae   : > { %1525 = vmatprep.subr.bf16.mxu1 %v1744_v47 }
  0xaf   : > { %526 = vmatmul.mubr.bf16.vlgmr.msra.gmra.mrb[0].mxu0 %v331_v38 }
  0xb0   : > { %535 = vmatprep.mubr.bf16.mxu0 %v2001_v0 }
  0xb1   : > { %1526 = vmatpush3.bf16.msra.mxu1 %v1744_v47 }
  0xb2   : > { %1527 = vmatprep.subr.bf16.mxu1 %v1745_v48 }
  0xb5   : > { %1528 = vmatpush3.bf16.msra.mxu1 %v1745_v48 }
  0xb6   : > { %1529 = vmatprep.subr.bf16.mxu1 %v1746_v49 }
  0xb7   : > { %536 = vmatmul.mubr.bf16.gmra.mrb[4].mxu0 %v332_v40 }
  0xb8   : > { %1537 = vmatprep.mubr.msk.bf16.mxu0 %vm2003_vm0, %v2002_v41 }
  0xb9   : > { %1530 = vmatpush3.bf16.msra.mxu1 %v1746_v49 }
  0xba   : > { %1547 = vmatprep.subr.bf16.mxu1 %v2002_v41 }
  0xbc   : > { %1532 = vmatmul.mubr.bf16.vlgmr.msra.gmra.mrb[0].mxu1 %v332_v40 }
  0xbd   : > { %1549 = vmatprep.mubr.msk.bf16.mxu1 %vm2003_vm0, %v2002_v41 }
 0x182   : > { %v527_v50 = vpop.f32.mrb[0].mxu0 }
 0x183   : > { %v529_v51 = vpop.f32.mrb[1].mxu0 }
 0x184   : > { %v531_v52 = vpop.f32.mrb[2].mxu0 }
 0x185   : > { %v595_v53 = vpack.c.bf16 %v531_v52, %v527_v50  ;;  %v533_v54 = vpop.f32.mrb[3].mxu0 }
 0x186   : > { %v596_v55 = vpack.c.bf16 %v533_v54, %v529_v51 }
 0x188   : > { %v615_v56 = vsel %vm610_vm1, %v596_v55, 0  ;;  %730 = vrot.lane.b32.xlu0 %v596_v55, %s2004_s23 }
 0x189   : > { %1536 = vmatpush3.bf16.xpose.msra.mxu0 %v615_v56 }
 0x18a   : > { %v537_v57 = vpop.f32.mrb[4].mxu0  ;;  %1541 = vmatprep.subr.bf16.mxu0 %v2002_v41 }
 0x18b   : > { %v539_v58 = vpop.f32.mrb[5].mxu0 }
 0x18c   : > { %727 = vrot.lane.b32.xlu0 %v595_v53, %s2004_s23  ;;  %v541_v59 = vpop.f32.mrb[6].mxu0 }
 0x18d   : > { %v598_v60 = vpack.c.bf16 %v541_v59, %v537_v57  ;;  %v543_v61 = vpop.f32.mrb[7].mxu0 }
 0x18e   : > { %v599_v62 = vpack.c.bf16 %v543_v61, %v539_v58 }
 0x18f   : > { %v1533_v3 = vpop.f32.mrb[0].mxu1 }
 0x190   : > { %1538 = vmatmul.mubr.msk.bf16.vlgmr.msra.gmra.mrb[8].mxu0 %vm610_vm1, %v595_v53  ;;  %983 = vrot.lane.b32.xlu1 %v599_v62, %s2004_s23  ;;  %v869_v2 = vsel %vm610_vm1, %v599_v62, 0  ;;  %v580_v5 = vpop.f32.mrb[1].mxu1 }
 0x191   : > { %1543 = vmatprep.mubr.msk.bf16.mxu0 %vm2003_vm0, %v2002_v41  ;;  %v1534_v7 = vpop.f32.mrb[2].mxu1 }
 0x192   : > { %v2296_v8 = vpack.c.bf16 %v1534_v7, %v1533_v3  ;;  %v583_v9 = vpop.f32.mrb[3].mxu1 }
 0x193   : > { %v597_v10 = vpack.c.bf16 %v583_v9, %v580_v5 }
 0x194   : > { %980 = vrot.lane.b32.xlu1 %v598_v60, %s2004_s23 }
 0x195   : > { %1542 = vmatpush3.bf16.msra.mxu0 %v597_v10 }
 0x196   : > { %1553 = vmatprep.subr.bf16.mxu0 %v2002_v41 }
 0x1fa   : > { %v731_v63 = vpop.permute.xlu0 %730 }
 0x1fb   : > { %v736_v0 = vsel %vm610_vm1, %v731_v63, 0 }
 0x1fc   : > { %1548 = vmatpush3.bf16.xpose.msra.mxu1 %v736_v0 }
 0x1fd   : > { %1559 = vmatprep.subr.bf16.mxu1 %v2002_v41 }
 0x1fe   : > { %v728_v1 = vpop.permute.xlu0 %727 }
 0x202   : > { %v984_v4 = vpop.permute.xlu1 %983 }
 0x203   : > { %1550 = vmatmul.mubr.msk.bf16.vlgmr.msra.gmra.mrb[4].mxu1 %vm610_vm1, %v728_v1  ;;  %v989_v6 = vsel %vm610_vm1, %v984_v4, 0 }
 0x204   : > { %1560 = vmatpush3.bf16.xpose.msra.mxu1 %v869_v2  ;;  %1561 = vmatprep.mubr.msk.bf16.mxu1 %vm2003_vm0, %v2002_v41 }
 0x205   : > { %1571 = vmatprep.subr.bf16.mxu1 %v2002_v41 }
 0x206   : > { %v981_v11 = vpop.permute.xlu1 %980 }
 0x20b   : > { %1562 = vmatmul.mubr.msk.bf16.vlgmr.msra.gmra.mrb[8].mxu1 %vm610_vm1, %v598_v60 }
 0x20c   : > { %1572 = vmatpush3.bf16.xpose.msra.mxu1 %v989_v6  ;;  %1573 = vmatprep.mubr.msk.bf16.mxu1 %vm2003_vm0, %v2002_v41 }
 0x213   : > { %1574 = vmatmul.mubr.msk.bf16.vlgmr.msra.gmra.mrb[12].mxu1 %vm610_vm1, %v981_v11 }
 0x263   : > { %v651_v12 = vpop.f32.mrb[8].mxu0 }
 0x264   : > { %v1539_v13 = vpop.f32.mrb[9].mxu0  ;;  %v659_v14 = vsel %vm658_vm2, %v651_v12, -inf }
 0x265   : > { %660 = vmax.xlane.f32.xlu0 %v659_v14  ;;  %v654_v15 = vpop.f32.mrb[10].mxu0 }
 0x266   : > { %v1540_v16 = vpop.f32.mrb[11].mxu0  ;;  %v662_v17 = vsel %vm658_vm2, %v654_v15, -inf }
 0x267   : > { %663 = vmax.xlane.f32.xlu1 %v662_v17 }
 0x2d6   : > { %v772_v18 = vpop.f32.mrb[4].mxu1 }
 0x2d7   : > { %v1551_v19 = vpop.f32.mrb[5].mxu1  ;;  %v779_v20 = vsel %vm658_vm2, %v772_v18, -inf }
 0x2d8   : > { %v775_v21 = vpop.f32.mrb[6].mxu1  ;;  %780 = vmax.xlane.f32.xlu0 %v779_v20 }
 0x2d9   : > { %v1552_v22 = vpop.f32.mrb[7].mxu1  ;;  %v782_v23 = vsel %vm658_vm2, %v775_v21, -inf }
 0x2da   : > { %v1747_v22 = vld [vmem:[#allocation11] sm:$0xff]  }
 0x2db   : > { %1583 = vmatprep.subr.bf16.mxu1 %v1747_v22 }
 0x2dc   : > { %783 = vmax.xlane.f32.xlu0 %v782_v23  ;;  %v1748_v23 = vld [vmem:[#allocation11 + $0x8] sm:$0xff]   ;;  %1584 = vmatpush3.bf16.msra.mxu1 %v1747_v22 }
 0x2dd   : > { %1585 = vmatprep.subr.bf16.mxu1 %v1748_v23 }
 0x2de   : > { %v905_v24 = vpop.f32.mrb[8].mxu1 }
 0x2df   : > { %v1563_v25 = vpop.f32.mrb[9].mxu1  ;;  %v912_v26 = vsel %vm658_vm2, %v905_v24, -inf }
 0x2e0   : > { %913 = vmax.xlane.f32.xlu1 %v912_v26  ;;  %v908_v27 = vpop.f32.mrb[10].mxu1  ;;  %1586 = vmatpush3.bf16.msra.mxu1 %v1748_v23 }
 0x2e1   : > { %v1564_v28 = vpop.f32.mrb[11].mxu1  ;;  %v915_v29 = vsel %vm658_vm2, %v908_v27, -inf }
 0x2e2   : > { %916 = vmax.xlane.f32.xlu0 %v915_v29  ;;  %v1751_v28 = vld [vmem:[#allocation11 + $0x20] sm:$0xff]   ;;  %v1752_v29 = vld [vmem:[#allocation11 + $0x28] sm:$0xff]  }
 0x2e6   : > { %v1025_v30 = vpop.f32.mrb[12].mxu1 }
 0x2e7   : > { %v1575_v31 = vpop.f32.mrb[13].mxu1  ;;  %v1032_v32 = vsel %vm658_vm2, %v1025_v30, -inf }
 0x2e8   : > { %1033 = vmax.xlane.f32.xlu1 %v1032_v32  ;;  %v1028_v33 = vpop.f32.mrb[14].mxu1 }
 0x2e9   : > { %v1576_v34 = vpop.f32.mrb[15].mxu1  ;;  %v1035_v35 = vsel %vm658_vm2, %v1028_v33, -inf }
 0x2ea   : > { %1036 = vmax.xlane.f32.xlu0 %v1035_v35  ;;  %v1753_v35 = vld [vmem:[#allocation11 + $0x30] sm:$0xff]  }
 0x2f2   : > { %v661_v36 = vpop.xlane.xlu0 %660 }
 0x2f3   : > { %v665_v37 = vsub.f32 %v651_v12, %v661_v36 }
 0x2f4   : > { %v664_v38 = vpop.xlane.xlu1 %663 }
 0x2f5   : > { %v667_v39 = vmul.f32 1.442695, %v665_v37  ;;  %v666_v40 = vsub.f32 %v654_v15, %v664_v38 }
 0x2f7   : > { %v669_v42 = vmul.f32 1.442695, %v666_v40  ;;  %1755 = vpow2.f32 %v667_v39 }
 0x2f9   : > { %1757 = vpow2.f32 %v669_v42  ;;  %799 = vrot.lane.b32.xlu1 %v597_v10, %s2004_s23 }
 0x300   : > { %1052 = vrot.lane.b32.xlu0 %v2296_v8, %s2004_s23 }
 0x301   : > { %v1756_v43 = vpop.eup %1755 }
 0x302   : > { %v671_v15 = vsel %vm658_vm2, %v1756_v43, 0.0 }
 0x303   : > { %v1758_v44 = vpop.eup %1757 }
 0x304   : > { %v677_v45 = vpack.c.bf16 %v1758_v44, %v1756_v43  ;;  %v674_v16 = vsel %vm658_vm2, %v1758_v44, 0.0 }
 0x306   : > { %1544 = vmatmul.mubr.msk.bf16.vlgmr.msra.gmra.mrb[12].mxu0 %vm658_vm2, %v677_v45 }
 0x307   : > { %1555 = vmatprep.mubr.msk.bf16.mxu0 %vm2003_vm0, %v2002_v41 }
 0x365   : > { %v781_v46 = vpop.xlane.xlu0 %780 }
 0x366   : > { %v785_v47 = vsub.f32 %v772_v18, %v781_v46  ;;  %v1754_v46 = vld [vmem:[#allocation11 + $0x38] sm:$0xff]  }
 0x368   : > { %v787_v48 = vmul.f32 1.442695, %v785_v47 }
 0x369   : > { %v784_v49 = vpop.xlane.xlu0 %783 }
 0x36a   : > { %1759 = vpow2.f32 %v787_v48  ;;  %v786_v50 = vsub.f32 %v775_v21, %v784_v49 }
 0x36c   : > { %v789_v51 = vmul.f32 1.442695, %v786_v50 }
 0x36d   : > { %v914_v52 = vpop.xlane.xlu1 %913 }
 0x36e   : > { %1761 = vpow2.f32 %v789_v51  ;;  %v918_v53 = vsub.f32 %v905_v24, %v914_v52  ;;  %v1749_v24 = vld [vmem:[#allocation11 + $0x10] sm:$0xff]  }
 0x36f   : > { %v917_v54 = vpop.xlane.xlu0 %916  ;;  %1587 = vmatprep.subr.bf16.mxu1 %v1749_v24 }
 0x370   : > { %v920_v55 = vmul.f32 1.442695, %v918_v53  ;;  %v919_v56 = vsub.f32 %v908_v27, %v917_v54  ;;  %1588 = vmatpush3.bf16.msra.mxu1 %v1749_v24  ;;  %v1750_v27 = vld [vmem:[#allocation11 + $0x18] sm:$0xff]  }
 0x371   : > { %1589 = vmatprep.subr.bf16.mxu1 %v1750_v27 }
 0x372   : > { %v922_v57 = vmul.f32 1.442695, %v919_v56  ;;  %1763 = vpow2.f32 %v920_v55 }
 0x374   : > { %v1760_v58 = vpop.eup %1759  ;;  %1765 = vpow2.f32 %v922_v57  ;;  %1590 = vmatpush3.bf16.msra.mxu1 %v1750_v27 }
 0x375   : > { %v1034_v59 = vpop.xlane.xlu1 %1033  ;;  %v791_v60 = vsel %vm658_vm2, %v1760_v58, 0.0  ;;  %1591 = vmatprep.subr.bf16.mxu1 %v1751_v28 }
 0x376   : > { %v1038_v61 = vsub.f32 %v1025_v30, %v1034_v59  ;;  %792 = vadd.xlane.f32.xlu1 %v791_v60 }
 0x377   : > { %v1037_v62 = vpop.xlane.xlu0 %1036 }
 0x378   : > { %v1762_v63 = vpop.eup %1761  ;;  %v1040_v0 = vmul.f32 1.442695, %v1038_v61  ;;  %v1039_v1 = vsub.f32 %v1028_v33, %v1037_v62  ;;  %1592 = vmatpush3.bf16.msra.mxu1 %v1751_v28 }
 0x379   : > { %v800_v2 = vpop.permute.xlu1 %799  ;;  %v794_v3 = vsel %vm658_vm2, %v1762_v63, 0.0  ;;  %v797_v4 = vpack.c.bf16 %v1762_v63, %v1760_v58  ;;  %1593 = vmatprep.subr.bf16.mxu1 %v1752_v29 }
 0x37a   : > { %1767 = vpow2.f32 %v1040_v0  ;;  %v1042_v5 = vmul.f32 1.442695, %v1039_v1  ;;  %1554 = vmatpush3.bf16.msra.mxu0 %v800_v2  ;;  %795 = vadd.xlane.f32.xlu0 %v794_v3 }
 0x37b   : > { %1565 = vmatprep.subr.bf16.mxu0 %v2002_v41  ;;  %v1053_v11 = vpop.permute.xlu0 %1052 }
 0x37c   : > { %1769 = vpow2.f32 %v1042_v5  ;;  %v1764_v6 = vpop.eup %1763  ;;  %1594 = vmatpush3.bf16.msra.mxu1 %v1752_v29 }
 0x37d   : > { %1556 = vmatmul.mubr.msk.bf16.vlgmr.msra.gmra.mrb[16].mxu0 %vm658_vm2, %v797_v4  ;;  %v924_v17 = vsel %vm658_vm2, %v1764_v6, 0.0  ;;  %1595 = vmatprep.subr.bf16.mxu1 %v1753_v35 }
 0x37e   : > { %v1766_v7 = vpop.eup %1765  ;;  %1566 = vmatpush3.bf16.msra.mxu0 %v2296_v8  ;;  %1567 = vmatprep.mubr.msk.bf16.mxu0 %vm2003_vm0, %v2002_v41 }
 0x37f   : > { %1577 = vmatprep.subr.bf16.mxu0 %v2002_v41  ;;  %v930_v9 = vpack.c.bf16 %v1766_v7, %v1764_v6  ;;  %v927_v18 = vsel %vm658_vm2, %v1766_v7, 0.0 }
 0x380   : > { %1596 = vmatpush3.bf16.msra.mxu1 %v1753_v35 }
 0x381   : > { %1597 = vmatprep.subr.bf16.mxu1 %v1754_v46 }
 0x384   : > { %v1768_v10 = vpop.eup %1767  ;;  %1598 = vmatpush3.bf16.msra.mxu1 %v1754_v46 }
 0x385   : > { %1568 = vmatmul.mubr.msk.bf16.vlgmr.msra.gmra.mrb[20].mxu0 %vm658_vm2, %v930_v9  ;;  %v1044_v12 = vsel %vm658_vm2, %v1768_v10, 0.0 }
 0x386   : > { %v1770_v13 = vpop.eup %1769  ;;  %1578 = vmatpush3.bf16.msra.mxu0 %v1053_v11  ;;  %1045 = vadd.xlane.f32.xlu1 %v1044_v12 }
 0x387   : > { %v1047_v14 = vsel %vm658_vm2, %v1770_v13, 0.0  ;;  %1579 = vmatprep.mubr.msk.bf16.mxu0 %vm2003_vm0, %v2002_v41  ;;  %v1050_v8 = vpack.c.bf16 %v1770_v13, %v1768_v10 }
 0x388   : > { %1048 = vadd.xlane.f32.xlu0 %v1047_v14 }
 0x38a   : > { %672 = vadd.xlane.f32.xlu1 %v671_v15 }
 0x38c   : > { %675 = vadd.xlane.f32.xlu0 %v674_v16 }
 0x38d   : > { %1580 = vmatmul.mubr.msk.bf16.vlgmr.msra.gmra.mrb[24].mxu0 %vm658_vm2, %v1050_v8 }
 0x38e   : > { %925 = vadd.xlane.f32.xlu1 %v924_v17  ;;  %v1453_v17 = vld [vmem:[#allocation12] ss:$0 sm:$0xff] }
 0x390   : > { %928 = vadd.xlane.f32.xlu0 %v927_v18 }
 0x3d9   : > { %v2332_v19 = vpop.f32.mrb[12].mxu0 }
 0x3da   : > { %v1545_v20 = vpop.f32.mrb[13].mxu0 }
 0x3db   : > { %v2334_v41 = vpop.f32.mrb[14].mxu0 }
 0x3dc   : > { %v1546_v21 = vpop.f32.mrb[15].mxu0 }
 0x403   : > { %v793_v25 = vpop.xlane.xlu1 %792 }
 0x404   : > { %1771 = vrcp.f32 %v793_v25 }
 0x407   : > { %v796_v26 = vpop.xlane.xlu0 %795 }
 0x408   : > { %1773 = vrcp.f32 %v796_v26 }
 0x40e   : > { %v1772_v31 = vpop.eup %1771 }
 0x412   : > { %v1774_v33 = vpop.eup %1773 }
 0x413   : > { %v1046_v39 = vpop.xlane.xlu1 %1045 }
 0x414   : > { %1775 = vrcp.f32 %v1046_v39 }
 0x415   : > { %v1049_v40 = vpop.xlane.xlu0 %1048 }
 0x416   : > { %1777 = vrcp.f32 %v1049_v40 }
 0x417   : > { %v673_v57 = vpop.xlane.xlu1 %672 }
 0x418   : > { %1779 = vrcp.f32 %v673_v57 }
 0x419   : > { %v676_v58 = vpop.xlane.xlu0 %675 }
 0x41a   : > { %1781 = vrcp.f32 %v676_v58 }
 0x41b   : > { %v926_v59 = vpop.xlane.xlu1 %925 }
 0x41c   : > { %1783 = vrcp.f32 %v926_v59 }
 0x41d   : > { %v929_v3 = vpop.xlane.xlu0 %928 }
 0x41e   : > { %v1776_v49 = vpop.eup %1775  ;;  %1785 = vrcp.f32 %v929_v3 }
 0x420   : > { %v1778_v51 = vpop.eup %1777 }
 0x422   : > { %v1780_v60 = vpop.eup %1779 }
 0x423   : > { %v724_v1 = vmul.f32 %v1780_v60, %v2332_v19 }
 0x424   : > { %v1782_v61 = vpop.eup %1781 }
 0x425   : > { %v725_v2 = vmul.f32 %v1782_v61, %v2334_v41 }
 0x426   : > { %v1784_v7 = vpop.eup %1783 }
 0x428   : > { %v1786_v9 = vpop.eup %1785 }
 0x450   : > { %v839_v30 = vpop.f32.mrb[16].mxu0 }
 0x451   : > { %v1557_v32 = vpop.f32.mrb[17].mxu0  ;;  %v848_v36 = vmul.f32 %v1772_v31, %v839_v30 }
 0x452   : > { %v842_v34 = vpop.f32.mrb[18].mxu0 }
 0x453   : > { %v849_v37 = vmul.f32 %v1774_v33, %v842_v34  ;;  %v1558_v38 = vpop.f32.mrb[19].mxu0 }
 0x455   : > { %v1705_v42 = vpack.i.bf16 %v849_v37, %v848_v36 }
 0x457   : > { %1706 = vrot.lane.b32.xlu1 %v1705_v42, %s2004_s23 }
 0x458   : > { %v968_v43 = vpop.f32.mrb[20].mxu0 }
 0x459   : > { %v1569_v44 = vpop.f32.mrb[21].mxu0  ;;  %v977_v11 = vmul.f32 %v1784_v7, %v968_v43 }
 0x45a   : > { %v971_v45 = vpop.f32.mrb[22].mxu0 }
 0x45b   : > { %v1570_v47 = vpop.f32.mrb[23].mxu0  ;;  %v978_v12 = vmul.f32 %v1786_v9, %v971_v45 }
 0x460   : > { %v1092_v48 = vpop.f32.mrb[24].mxu0 }
 0x461   : > { %v1581_v50 = vpop.f32.mrb[25].mxu0  ;;  %v1101_v53 = vmul.f32 %v1776_v49, %v1092_v48 }
 0x462   : > { %v1095_v52 = vpop.f32.mrb[26].mxu0 }
 0x463   : > { %v1102_v54 = vmul.f32 %v1778_v51, %v1095_v52  ;;  %v1582_v55 = vpop.f32.mrb[27].mxu0 }
 0x465   : > { %v1710_v56 = vpack.i.bf16 %v1102_v54, %v1101_v53 }
 0x467   : > { %1711 = vrot.lane.b32.xlu0 %v1710_v56, %s2004_s23 }
 0x4c9   : > { %v1707_v62 = vpop.permute.xlu1 %1706 }
 0x4ca   : > { %v1709_v63 = vunpack.i.h.bf16 %v1707_v62  ;;  %v1708_v0 = vunpack.i.l.bf16 %v1707_v62 }
 0x4cc   : > { %v858_v4 = vsel %vm610_vm1, %v724_v1, %v1708_v0  ;;  %v859_v5 = vsel %vm610_vm1, %v725_v2, %v1709_v63 }
 0x4cd   : > { %v860_v6 = vpack.c.bf16 %v859_v5, %v858_v4 }
 0x4cf   : > { %1599 = vmatprep.mubr.bf16.mxu1 %v860_v6 }
 0x4d9   : > { %v1712_v10 = vpop.permute.xlu0 %1711 }
 0x4da   : > { %v1714_v13 = vunpack.i.h.bf16 %v1712_v10  ;;  %v1713_v14 = vunpack.i.l.bf16 %v1712_v10 }
 0x4dc   : > { %v1112_v8 = vsel %vm610_vm1, %v978_v12, %v1714_v13  ;;  %v1111_v15 = vsel %vm610_vm1, %v977_v11, %v1713_v14 }
 0x4dd   : > { %v1113_v16 = vpack.c.bf16 %v1112_v8, %v1111_v15 }
 0x4df   : > { %1600 = vmatmul.mubr.bf16.vlgmr.msra.gmra.mrb[16].mxu1 %v1113_v16 }
 0x5b2   : > { %v1601_v18 = vpop.f32.mrb[16].mxu1 }
 0x5b3   : > { %v1231_v19 = vadd.f32 %v1601_v18, %v1453_v17  ;;  %v1222_v20 = vpop.f32.mrb[17].mxu1 }
 0x5b4   : > { %v1223_v41 = vadd.f32 %v1453_v17, %v1222_v20  ;;  %v1602_v21 = vpop.f32.mrb[18].mxu1 }
 0x5b5   : > { %1239 = vst [vmem:[#allocation5 + $0x10] sm:$0xff] %v1231_v19  ;;  %v1234_v22 = vadd.f32 %v1602_v21, %v1453_v17  ;;  %v1225_v23 = vpop.f32.mrb[19].mxu1 }
 0x5b6   : > { %1237 = vst [vmem:[#allocation5] sm:$0xff] %v1223_v41  ;;  %v1226_v24 = vadd.f32 %v1453_v17, %v1225_v23 }
 0x5b7   : > { %1240 = vst [vmem:[#allocation5 + $0x18] sm:$0xff] %v1234_v22 }
 0x5b8   : > { %1238 = vst [vmem:[#allocation5 + $0x8] sm:$0xff] %v1226_v24 }
 0x5bc   : > { %v1252_v25 = vld [vmem:[#allocation5 + $0x10] sm:$0xf]  ;;  %v1255_v26 = vld [vmem:[#allocation5 + $0x14] sm:$0xf] }
 0x5bd   : > { %1465 = vst [vmem:[%s276_s27 + $0x4] sm:$0xf] %v1252_v25  ;;  %1466 = vst [vmem:[%s276_s27 + $0xc] sm:$0xf] %v1255_v26  ;;  %v1241_v27 = vld [vmem:[#allocation5] sm:$0xf] }
 0x5be   : > { %v1243_v28 = vld [vmem:[#allocation5 + $0x4] sm:$0xf]  ;;  %1242 = vst [vmem:[%s276_s27] sm:$0xf] %v1241_v27  ;;  %v1258_v29 = vld [vmem:[#allocation5 + $0x18] sm:$0xf] }
 0x5bf   : > { %1462 = vst [vmem:[%s276_s27 + $0x8] sm:$0xf] %v1243_v28  ;;  %v1261_v30 = vld [vmem:[#allocation5 + $0x1c] sm:$0xf]  ;;  %1467 = vst [vmem:[%s276_s27 + $0x14] sm:$0xf] %v1258_v29 }
 0x5c0   : > { %1468 = vst [vmem:[%s276_s27 + $0x1c] sm:$0xf] %v1261_v30  ;;  %v1246_v31 = vld [vmem:[#allocation5 + $0x8] sm:$0xf]  ;;  %v1249_v32 = vld [vmem:[#allocation5 + $0xc] sm:$0xf] }
 0x5c1   : > { %1463 = vst [vmem:[%s276_s27 + $0x10] sm:$0xf] %v1246_v31  ;;  %1464 = vst [vmem:[%s276_s27 + $0x18] sm:$0xf] %v1249_v32 }
 0x5c2   : > { %1914 = shalt.err (!%p1911_p5)
}
 0x5c3   : > { %s1915_s13 = scalar_lea.hbm %s2350_s7, 512  ;;  %s1919_s29 = scalar_lea.hbm %s2406_s4, 2048 }
 0x5c4   : > { %p1916_p9 = scmp.ne.s32.totalorder %s2350_s7, %s1915_s13  ;;  %p1920_p3 = scmp.lt.u32.totalorder %s2350_s7, %s2406_s4 }
 0x5c5   : > { %p1921_p7 = scmp.lt.u32.totalorder %s1919_s29, %s1915_s13  ;;  %p1923_p1 = scmp.lt.u32.totalorder %s1915_s13, %s2350_s7 }
 0x5c6   : > { %p1917_p12 = pnand %p1916_p9, %p2181_p6 }
 0x5c7   : > { %p1922_p13 = por %p1921_p7, %p1920_p3 }
 0x5c8   : > { %p1918_p11 = pneg %p1917_p12 }
 0x5c9   : > { %p1924_p2 = por %p1923_p1, %p1922_p13 }
 0x5cb   : > { %p1925_p4 = pnand %p1924_p2, %p1918_p11 }
 0x5cd   : > { %1928 = shalt.err (!%p1925_p4)
}
 0x5ce   : > { %s2006_s27 = smov 4  }
 0x5cf   : > { %1617 = dma.vmem_to_hbm [thread:$0]  (%p2181_p6), %s2352_s22, 512, %s2350_s7, %s1265_s18, %s2004_s23, %s2004_s23, %s2006_s27  }
 0x5d0 PF: > { %p1644_p10 = scmp.ge.s32.totalorder %s1991_s20, 2  ;;  %s1296_s28 = sand.u32 1, %s1971_s15  }
 0x5d1   : > { %p2427_p8 = scmp.ne.s32.totalorder %s2415_s26, 0  ;;  %s1297_s5 = scalar_lea.sflag [#allocation8], %s1296_s28 }
 0x5d3   : > { %p1634_p0 = pnand %p1644_p10, %p2427_p8 }
 0x5d5   : > { %1966 = dma.done.wait (!%p1634_p0), %s1297_s5, 512  }
 0x5d6   : > { %1968 = vsyncadd (!%p1634_p0), %s1297_s5, 4294966784  ;;  %s22_s20 = sadd.s32 1, %s1991_s20   ;;  %s2428_s15 = smov %s1975_s16 }
 0x5d7   : > { %p19_p5 = scmp.ge.s32.totalorder %s22_s20, 6   ;;  %s2429_s16 = smov %s1979_s17 }
 0x5d8   : > { %s2430_s17 = smov %s2190_s14  ;;  %s2431_s18 = smov %s1987_s19 }
 0x5d9   : > { %s2432_s19 = smov %s2434_s1  ;;  %21 = sbr.rel (!%p19_p5) target bundleno = 10 (0xa), region = 107 }
 0x5e0   :  { %1302 = vsyncpa [#allocation7], 1 }
 0x5e1   :  { %1304 = vsyncpa [#allocation7 + $0x1], 1 }
 0x5e2   :  { %1305 = vsyncpa [#allocation10], 1 }
 0x5e3   :  { %1306 = vsyncpa [#allocation13], 1 }
 0x5e4   :  { %1307 = vsyncpa [#allocation8], 1 }
 0x5e5   :  { %1309 = vsyncpa [#allocation8 + $0x1], 1 }

</bundles_post_ra>
